<compile_context>
chip_gen: v7x
topology: tpu7x:2x2x1
jax: 0.10.0
libtpu: 0.0.40
codegen_flags: <defaults>
</compile_context>

<pallas_src>
import functools

import jax
import jax.numpy as jnp
from jax.experimental import pallas as pl
from jax.experimental.pallas import tpu as pltpu


def _round_up(x, m):
    return (x + m - 1) // m * m


def _cde_func_kernel(*refs, num_mid):
    """One batch tile of the CDE vector-field MLP.

    refs (num_mid > 0):  z, w_in, b_in, w_mid, b_mid, w_out, b_out, out
    refs (num_mid == 0): z, w_in, b_in, w_out, b_out, out
    z tile: (TB, H) f32. Weights pre-transposed (in, out), possibly bf16;
    biases f32. Matmuls accumulate in f32 on the MXU; bias add / relu / tanh
    stay in f32 (v5e-friendly); the store casts to the output dtype.
    """
    if num_mid > 0:
        (z_ref, w_in_ref, b_in_ref, w_mid_ref, b_mid_ref,
         w_out_ref, b_out_ref, o_ref) = refs
    else:
        z_ref, w_in_ref, b_in_ref, w_out_ref, b_out_ref, o_ref = refs

    mm_dtype = w_in_ref.dtype

    h = jnp.dot(z_ref[...].astype(mm_dtype), w_in_ref[...],
                preferred_element_type=jnp.float32) + b_in_ref[...]
    h = jnp.maximum(h, 0.0)

    # Middle hidden->hidden layers, weights stacked as (L, HH, HH).
    for l in range(num_mid):  # static unroll (L is small and compile-time)
        h = jnp.dot(h.astype(mm_dtype), w_mid_ref[l],
                    preferred_element_type=jnp.float32) + b_mid_ref[l]
        h = jnp.maximum(h, 0.0)

    out = jnp.dot(h.astype(mm_dtype), w_out_ref[...],
                  preferred_element_type=jnp.float32) + b_out_ref[...]
    o_ref[...] = jnp.tanh(out).astype(o_ref.dtype)


def prepare_params(params, *, input_channels, hidden_channels,
                   matmul_dtype=jnp.float32):
    """One-time parameter prep: cast matmul weights and pad the output layer to
    a lane-dense multiple of 128. Call once per solve and reuse the result
    across every vector-field evaluation."""
    w_in, b_in, w_mid, b_mid, w_out, b_out = params
    H = hidden_channels
    HH = w_in.shape[1]
    OUT = hidden_channels * input_channels
    assert w_in.shape == (H, HH)
    assert w_out.shape == (HH, OUT)
    L = int(w_mid.shape[0])

    # Lane-dense output: pad OUT up to a multiple of 128 so the final store is
    # an unmasked vst (guard for configs like input_channels=3). Sliced after.
    OUT_p = _round_up(OUT, 128)
    if OUT_p != OUT:
        w_out = jnp.pad(w_out, ((0, 0), (0, OUT_p - OUT)))
        b_out = jnp.pad(b_out, ((0, 0), (0, OUT_p - OUT)))

    prepped = dict(
        w_in=w_in.astype(matmul_dtype),
        b_in=b_in.astype(jnp.float32),
        w_out=w_out.astype(matmul_dtype),
        b_out=b_out.astype(jnp.float32),
        num_mid=L,
        H=H, HH=HH, OUT=OUT, OUT_p=OUT_p,
        input_channels=input_channels,
        hidden_channels=hidden_channels,
    )
    if L > 0:
        prepped["w_mid"] = w_mid.astype(matmul_dtype)
        prepped["b_mid"] = b_mid.astype(jnp.float32)
    return prepped


def cde_func_forward(z, prepped, *, t=None, batch_tile=256,
                     out_dtype=jnp.float32, single_buffer_weights=True):
    """z: (B, hidden) f32 -> (B, hidden, input). `t` is unused (parity with the
    torch forward(t, z) signature)."""
    del t
    B, H = z.shape
    assert H == prepped["H"]
    HH = prepped["HH"]
    OUT = prepped["OUT"]
    OUT_p = prepped["OUT_p"]
    L = prepped["num_mid"]
    hidden_channels = prepped["hidden_channels"]
    input_channels = prepped["input_channels"]

    # Batch tiling: TB is a multiple of 8 (f32 sublane packing); 256 rows fill
    # the v6e/v7x MXU. Cap TB at ceil(B/2) so the parallel grid keeps >= 2
    # steps when B allows (both v7x TensorCores busy + pipelined DMAs).
    TB = min(batch_tile, max(8, _round_up(-(-B // 2), 8)))
    B_p = _round_up(B, TB)
    if B_p != B:
        z = jnp.pad(z, ((0, B_p - B), (0, 0)))
    num_tiles = B_p // TB

    args = [z, prepped["w_in"], prepped["b_in"]]
    if L > 0:
        args += [prepped["w_mid"], prepped["b_mid"]]
    args += [prepped["w_out"], prepped["b_out"]]

    kernel = functools.partial(_cde_func_kernel, num_mid=L)

    def _call(use_buffered):
        def wspec(shape):
            # Weights / biases: same block every step -> VMEM-resident.
            index_map = lambda i: (0,) * len(shape)
            if use_buffered:
                # Constant index_map: no re-DMA, so a second buffer is wasted
                # VMEM; request single buffering.
                return pl.BlockSpec(shape, index_map,
                                    pipeline_mode=pl.Buffered(1))
            return pl.BlockSpec(shape, index_map)

        in_specs = [
            # Activations: pipelined over the batch grid.
            pl.BlockSpec((TB, H), lambda i: (i, 0)),
            wspec((H, HH)),
            wspec((1, HH)),
        ]
        if L > 0:
            in_specs += [wspec((L, HH, HH)), wspec((L, 1, HH))]
        in_specs += [wspec((HH, OUT_p)), wspec((1, OUT_p))]

        return pl.pallas_call(
            kernel,
            out_shape=jax.ShapeDtypeStruct((B_p, OUT_p), out_dtype),
            grid=(num_tiles,),
            in_specs=in_specs,
            out_specs=pl.BlockSpec((TB, OUT_p), lambda i: (i, 0)),
            compiler_params=pltpu.CompilerParams(
                dimension_semantics=("parallel",)),  # megacore on v7x
        )(*args)

    if single_buffer_weights:
        try:
            flat = _call(True)
        except Exception:
            # pipeline_mode / Buffered(1) not supported by this JAX build:
            # fall back to default double-buffered weights (tiny VMEM cost).
            flat = _call(False)
    else:
        flat = _call(False)

    # Only pay for a slice copy when padding was actually applied.
    if B_p != B or OUT_p != OUT:
        flat = flat[:B, :OUT]
    # torch: .view(*z.shape[:-1], hidden_channels, input_channels)
    return flat.reshape(B, hidden_channels, input_channels)


def init_params(key, input_channels, hidden_channels, hidden_hidden_channels,
                num_hidden_layers):
    """Deterministic synthetic init, PyTorch Linear-style fan-in bounds,
    returned pre-transposed to (in, out) for the kernel. Stored in f32."""
    HH = hidden_hidden_channels
    H = hidden_channels
    OUT = input_channels * hidden_channels
    L = num_hidden_layers - 1
    keys = jax.random.split(key, 6)

    def uinit(k, shape, fan_in):
        bound = 1.0 / jnp.sqrt(fan_in)
        return jax.random.uniform(k, shape, jnp.float32, -bound, bound)

    # linear_in: weight (HH, H) -> pass as (H, HH)
    w_in = uinit(keys[0], (HH, H), H).T
    b_in = uinit(keys[1], (1, HH), H)
    # middle linears: (L, HH, HH), each weight (HH, HH) -> transpose last two
    w_mid = jnp.swapaxes(uinit(keys[2], (max(L, 0), HH, HH), HH), -1, -2)
    b_mid = uinit(keys[3], (max(L, 0), 1, HH), HH)
    # linear_out: weight (OUT, HH) -> pass as (HH, OUT)
    w_out = uinit(keys[4], (OUT, HH), HH).T
    b_out = uinit(keys[5], (1, OUT), HH)
    return (w_in, b_in, w_mid, b_mid, w_out, b_out)


def _reference(z, params, hidden_channels, input_channels):
    """Pure-JAX f32 reference of the same math."""
    w_in, b_in, w_mid, b_mid, w_out, b_out = params
    h = jnp.maximum(z @ w_in + b_in, 0.0)
    for l in range(w_mid.shape[0]):
        h = jnp.maximum(h @ w_mid[l] + b_mid[l], 0.0)
    out = jnp.tanh(h @ w_out + b_out)
    return out.reshape(z.shape[0], hidden_channels, input_channels)


if __name__ == "__main__":
    # Config A: typical module shapes. Stack many solver evaluation points into
    # the batch (2048 rows = 8 tiles of 256) so the call amortizes launch and
    # per-grid-step overhead instead of being overhead-bound.
    input_channels = 4
    hidden_channels = 32
    hidden_hidden_channels = 128
    num_hidden_layers = 3  # -> 2 middle linears
    B = 2048

    key = jax.random.PRNGKey(0)
    kz, kp, kz2, kp2 = jax.random.split(key, 4)
    z = jax.random.normal(kz, (B, hidden_channels), jnp.float32)
    t = jnp.float32(0.0)  # unused by forward, kept for signature parity

    params = init_params(kp, input_channels, hidden_channels,
                         hidden_hidden_channels, num_hidden_layers)
    ref = _reference(z, params, hidden_channels, input_channels)

    # Default f32 matmul / f32 output path: tight correctness check.
    prepped = prepare_params(params, input_channels=input_channels,
                             hidden_channels=hidden_channels)
    out = jax.block_until_ready(cde_func_forward(z, prepped, t=t))
    assert out.shape == (B, hidden_channels, input_channels)
    assert jnp.allclose(out, ref, atol=1e-5, rtol=1e-5)

    # Opt-in bf16 matmul weights + bf16 output store (MXU-native, f32
    # accumulate; halves output writeback bytes): loose check against the f32
    # reference (tanh output bounded in [-1, 1]).
    prepped_bf16 = prepare_params(params, input_channels=input_channels,
                                  hidden_channels=hidden_channels,
                                  matmul_dtype=jnp.bfloat16)
    out_bf16 = jax.block_until_ready(
        cde_func_forward(z, prepped_bf16, t=t, out_dtype=jnp.bfloat16))
    assert out_bf16.shape == (B, hidden_channels, input_channels)
    assert jnp.allclose(out_bf16.astype(jnp.float32), ref, atol=3e-2, rtol=3e-2)

    # Config B: exercises L == 0 (no middle linears), OUT not a multiple of 128
    # (input_channels=3 -> OUT=96, padded to 128) and a ragged small batch.
    ic2, hc2, hh2, nl2, B2 = 3, 32, 64, 1, 10
    z2 = jax.random.normal(kz2, (B2, hc2), jnp.float32)
    params2 = init_params(kp2, ic2, hc2, hh2, nl2)
    prepped2 = prepare_params(params2, input_channels=ic2, hidden_channels=hc2)
    out2 = jax.block_until_ready(cde_func_forward(z2, prepped2))
    ref2 = _reference(z2, params2, hc2, ic2)
    assert out2.shape == (B2, hc2, ic2)
    assert jnp.allclose(out2, ref2, atol=1e-5, rtol=1e-5)

    print("KERNEL_OK")
</pallas_src>

<mosaic_0001>
module attributes {stable_mosaic.version = 11 : i64} {
  func.func @_cde_func_kernel(%arg0: i32, %arg1: memref<256x32xf32, #tpu.memory_space<vmem>>, %arg2: memref<32x128xf32, #tpu.memory_space<vmem>>, %arg3: memref<1x128xf32, #tpu.memory_space<vmem>>, %arg4: memref<2x128x128xf32, #tpu.memory_space<vmem>>, %arg5: memref<2x1x128xf32, #tpu.memory_space<vmem>>, %arg6: memref<128x128xf32, #tpu.memory_space<vmem>>, %arg7: memref<1x128xf32, #tpu.memory_space<vmem>>, %arg8: memref<256x128xf32, #tpu.memory_space<vmem>>) attributes {dimension_semantics = [#tpu.dimension_semantics<parallel>], iteration_bounds = array<i64: 8>, scalar_prefetch = 0 : i64, scratch_operands = 0 : i64, tpu.core_type = #tpu.core_type<tc>, window_params = [{transform_indices = @transform_0, window_bounds = array<i64: 256, 32>}, {pipeline_mode = #tpu.pipeline_mode<synchronous>, transform_indices = @transform_1, window_bounds = array<i64: 32, 128>}, {pipeline_mode = #tpu.pipeline_mode<synchronous>, transform_indices = @transform_2, window_bounds = array<i64: 1, 128>}, {pipeline_mode = #tpu.pipeline_mode<synchronous>, transform_indices = @transform_3, window_bounds = array<i64: 2, 128, 128>}, {pipeline_mode = #tpu.pipeline_mode<synchronous>, transform_indices = @transform_4, window_bounds = array<i64: 2, 1, 128>}, {pipeline_mode = #tpu.pipeline_mode<synchronous>, transform_indices = @transform_5, window_bounds = array<i64: 128, 128>}, {pipeline_mode = #tpu.pipeline_mode<synchronous>, transform_indices = @transform_6, window_bounds = array<i64: 1, 128>}, {transform_indices = @transform_7, window_bounds = array<i64: 256, 128>}]} {
    %c0 = arith.constant 0 : index
    %c0_0 = arith.constant 0 : index
    %0 = vector.load %arg1[%c0, %c0_0] : memref<256x32xf32, #tpu.memory_space<vmem>>, vector<256x32xf32>
    %c0_1 = arith.constant 0 : index
    %c0_2 = arith.constant 0 : index
    %1 = vector.load %arg2[%c0_1, %c0_2] : memref<32x128xf32, #tpu.memory_space<vmem>>, vector<32x128xf32>
    %cst = arith.constant dense<0.000000e+00> : vector<256x128xf32>
    %2 = tpu.matmul %0, %1, %cst {dimension_numbers = #tpu.dot_dimension_numbers<[1], [0], [0], [1], [0, 0, 1, 1], [], []>} : vector<256x32xf32>, vector<32x128xf32>, vector<256x128xf32> -> vector<256x128xf32>
    %c0_3 = arith.constant 0 : index
    %c0_4 = arith.constant 0 : index
    %3 = vector.load %arg3[%c0_3, %c0_4] : memref<1x128xf32, #tpu.memory_space<vmem>>, vector<1x128xf32>
    %4 = vector.broadcast %3 : vector<1x128xf32> to vector<256x128xf32>
    %5 = arith.addf %2, %4 : vector<256x128xf32>
    %cst_5 = arith.constant 0.000000e+00 : f32
    %6 = vector.broadcast %cst_5 : f32 to vector<256x128xf32>
    %7 = arith.maximumf %5, %6 : vector<256x128xf32>
    %c0_6 = arith.constant 0 : index
    %c0_7 = arith.constant 0 : index
    %c0_8 = arith.constant 0 : index
    %8 = vector.load %arg4[%c0_6, %c0_7, %c0_8] : memref<2x128x128xf32, #tpu.memory_space<vmem>>, vector<1x128x128xf32>
    %9 = vector.shape_cast %8 : vector<1x128x128xf32> to vector<128x128xf32>
    %cst_9 = arith.constant dense<0.000000e+00> : vector<256x128xf32>
    %10 = tpu.matmul %7, %9, %cst_9 {dimension_numbers = #tpu.dot_dimension_numbers<[1], [0], [0], [1], [0, 0, 1, 1], [], []>} : vector<256x128xf32>, vector<128x128xf32>, vector<256x128xf32> -> vector<256x128xf32>
    %c0_10 = arith.constant 0 : index
    %c0_11 = arith.constant 0 : index
    %c0_12 = arith.constant 0 : index
    %11 = vector.load %arg5[%c0_10, %c0_11, %c0_12] : memref<2x1x128xf32, #tpu.memory_space<vmem>>, vector<1x1x128xf32>
    %12 = vector.shape_cast %11 : vector<1x1x128xf32> to vector<1x128xf32>
    %13 = vector.broadcast %12 : vector<1x128xf32> to vector<256x128xf32>
    %14 = arith.addf %10, %13 : vector<256x128xf32>
    %cst_13 = arith.constant 0.000000e+00 : f32
    %15 = vector.broadcast %cst_13 : f32 to vector<256x128xf32>
    %16 = arith.maximumf %14, %15 : vector<256x128xf32>
    %c1 = arith.constant 1 : index
    %c0_14 = arith.constant 0 : index
    %c0_15 = arith.constant 0 : index
    %17 = vector.load %arg4[%c1, %c0_14, %c0_15] : memref<2x128x128xf32, #tpu.memory_space<vmem>>, vector<1x128x128xf32>
    %18 = vector.shape_cast %17 : vector<1x128x128xf32> to vector<128x128xf32>
    %cst_16 = arith.constant dense<0.000000e+00> : vector<256x128xf32>
    %19 = tpu.matmul %16, %18, %cst_16 {dimension_numbers = #tpu.dot_dimension_numbers<[1], [0], [0], [1], [0, 0, 1, 1], [], []>} : vector<256x128xf32>, vector<128x128xf32>, vector<256x128xf32> -> vector<256x128xf32>
    %c1_17 = arith.constant 1 : index
    %c0_18 = arith.constant 0 : index
    %c0_19 = arith.constant 0 : index
    %20 = vector.load %arg5[%c1_17, %c0_18, %c0_19] : memref<2x1x128xf32, #tpu.memory_space<vmem>>, vector<1x1x128xf32>
    %21 = vector.shape_cast %20 : vector<1x1x128xf32> to vector<1x128xf32>
    %22 = vector.broadcast %21 : vector<1x128xf32> to vector<256x128xf32>
    %23 = arith.addf %19, %22 : vector<256x128xf32>
    %cst_20 = arith.constant 0.000000e+00 : f32
    %24 = vector.broadcast %cst_20 : f32 to vector<256x128xf32>
    %25 = arith.maximumf %23, %24 : vector<256x128xf32>
    %c0_21 = arith.constant 0 : index
    %c0_22 = arith.constant 0 : index
    %26 = vector.load %arg6[%c0_21, %c0_22] : memref<128x128xf32, #tpu.memory_space<vmem>>, vector<128x128xf32>
    %cst_23 = arith.constant dense<0.000000e+00> : vector<256x128xf32>
    %27 = tpu.matmul %25, %26, %cst_23 {dimension_numbers = #tpu.dot_dimension_numbers<[1], [0], [0], [1], [0, 0, 1, 1], [], []>} : vector<256x128xf32>, vector<128x128xf32>, vector<256x128xf32> -> vector<256x128xf32>
    %c0_24 = arith.constant 0 : index
    %c0_25 = arith.constant 0 : index
    %28 = vector.load %arg7[%c0_24, %c0_25] : memref<1x128xf32, #tpu.memory_space<vmem>>, vector<1x128xf32>
    %29 = vector.broadcast %28 : vector<1x128xf32> to vector<256x128xf32>
    %30 = arith.addf %27, %29 : vector<256x128xf32>
    %31 = math.tanh %30 : vector<256x128xf32>
    %c0_26 = arith.constant 0 : index
    %c0_27 = arith.constant 0 : index
    %32 = vector.load %arg8[%c0_26, %c0_27] : memref<256x128xf32, #tpu.memory_space<vmem>>, vector<256x128xf32>
    tpu.vector_store %arg8[%c0_26, %c0_27], %31 {strides = array<i32>} : memref<256x128xf32, #tpu.memory_space<vmem>>, vector<256x128xf32>,
    return
  }
  func.func @transform_0(%arg0: i32) -> (i32, i32) {
    %c0_i32 = arith.constant 0 : i32
    %c0_i32_0 = arith.constant 0 : i32
    return %arg0, %c0_i32 : i32, i32
  }
  func.func @transform_1(%arg0: i32) -> (i32, i32) {
    %c0_i32 = arith.constant 0 : i32
    %c0_i32_0 = arith.constant 0 : i32
    %c0_i32_1 = arith.constant 0 : i32
    return %c0_i32, %c0_i32_0 : i32, i32
  }
  func.func @transform_2(%arg0: i32) -> (i32, i32) {
    %c0_i32 = arith.constant 0 : i32
    %c0_i32_0 = arith.constant 0 : i32
    %c0_i32_1 = arith.constant 0 : i32
    return %c0_i32, %c0_i32_0 : i32, i32
  }
  func.func @transform_3(%arg0: i32) -> (i32, i32, i32) {
    %c0_i32 = arith.constant 0 : i32
    %c0_i32_0 = arith.constant 0 : i32
    %c0_i32_1 = arith.constant 0 : i32
    %c0_i32_2 = arith.constant 0 : i32
    return %c0_i32, %c0_i32_0, %c0_i32_1 : i32, i32, i32
  }
  func.func @transform_4(%arg0: i32) -> (i32, i32, i32) {
    %c0_i32 = arith.constant 0 : i32
    %c0_i32_0 = arith.constant 0 : i32
    %c0_i32_1 = arith.constant 0 : i32
    %c0_i32_2 = arith.constant 0 : i32
    return %c0_i32, %c0_i32_0, %c0_i32_1 : i32, i32, i32
  }
  func.func @transform_5(%arg0: i32) -> (i32, i32) {
    %c0_i32 = arith.constant 0 : i32
    %c0_i32_0 = arith.constant 0 : i32
    %c0_i32_1 = arith.constant 0 : i32
    return %c0_i32, %c0_i32_0 : i32, i32
  }
  func.func @transform_6(%arg0: i32) -> (i32, i32) {
    %c0_i32 = arith.constant 0 : i32
    %c0_i32_0 = arith.constant 0 : i32
    %c0_i32_1 = arith.constant 0 : i32
    return %c0_i32, %c0_i32_0 : i32, i32
  }
  func.func @transform_7(%arg0: i32) -> (i32, i32) {
    %c0_i32 = arith.constant 0 : i32
    %c0_i32_0 = arith.constant 0 : i32
    return %arg0, %c0_i32 : i32, i32
  }
}

module attributes {stable_mosaic.version = 11 : i64} {
  func.func @_cde_func_kernel(%arg0: i32, %arg1: memref<256x32xf32, #tpu.memory_space<vmem>>, %arg2: memref<32x128xf32, #tpu.memory_space<vmem>>, %arg3: memref<1x128xf32, #tpu.memory_space<vmem>>, %arg4: memref<2x128x128xf32, #tpu.memory_space<vmem>>, %arg5: memref<2x1x128xf32, #tpu.memory_space<vmem>>, %arg6: memref<128x128xf32, #tpu.memory_space<vmem>>, %arg7: memref<1x128xf32, #tpu.memory_space<vmem>>, %arg8: memref<256x128xf32, #tpu.memory_space<vmem>>) attributes {dimension_semantics = [#tpu.dimension_semantics<parallel>], iteration_bounds = array<i64: 8>, scalar_prefetch = 0 : i64, scratch_operands = 0 : i64, tpu.core_type = #tpu.core_type<tc>, window_params = [{transform_indices = @transform_0, window_bounds = array<i64: 256, 32>}, {pipeline_mode = #tpu.pipeline_mode<synchronous>, transform_indices = @transform_1, window_bounds = array<i64: 32, 128>}, {pipeline_mode = #tpu.pipeline_mode<synchronous>, transform_indices = @transform_2, window_bounds = array<i64: 1, 128>}, {pipeline_mode = #tpu.pipeline_mode<synchronous>, transform_indices = @transform_3, window_bounds = array<i64: 2, 128, 128>}, {pipeline_mode = #tpu.pipeline_mode<synchronous>, transform_indices = @transform_4, window_bounds = array<i64: 2, 1, 128>}, {pipeline_mode = #tpu.pipeline_mode<synchronous>, transform_indices = @transform_5, window_bounds = array<i64: 128, 128>}, {pipeline_mode = #tpu.pipeline_mode<synchronous>, transform_indices = @transform_6, window_bounds = array<i64: 1, 128>}, {transform_indices = @transform_7, window_bounds = array<i64: 256, 128>}]} {
    %c0 = arith.constant 0 : index
    %c0_0 = arith.constant 0 : index
    %0 = vector.load %arg1[%c0, %c0_0] : memref<256x32xf32, #tpu.memory_space<vmem>>, vector<256x32xf32>
    %c0_1 = arith.constant 0 : index
    %c0_2 = arith.constant 0 : index
    %1 = vector.load %arg2[%c0_1, %c0_2] : memref<32x128xf32, #tpu.memory_space<vmem>>, vector<32x128xf32>
    %cst = arith.constant dense<0.000000e+00> : vector<256x128xf32>
    %2 = tpu.matmul %0, %1, %cst {dimension_numbers = #tpu.dot_dimension_numbers<[1], [0], [0], [1], [0, 0, 1, 1], [], []>} : vector<256x32xf32>, vector<32x128xf32>, vector<256x128xf32> -> vector<256x128xf32>
    %c0_3 = arith.constant 0 : index
    %c0_4 = arith.constant 0 : index
    %3 = vector.load %arg3[%c0_3, %c0_4] : memref<1x128xf32, #tpu.memory_space<vmem>>, vector<1x128xf32>
    %4 = vector.broadcast %3 : vector<1x128xf32> to vector<256x128xf32>
    %5 = arith.addf %2, %4 : vector<256x128xf32>
    %cst_5 = arith.constant 0.000000e+00 : f32
    %6 = vector.broadcast %cst_5 : f32 to vector<256x128xf32>
    %7 = arith.maximumf %5, %6 : vector<256x128xf32>
    %c0_6 = arith.constant 0 : index
    %c0_7 = arith.constant 0 : index
    %c0_8 = arith.constant 0 : index
    %8 = vector.load %arg4[%c0_6, %c0_7, %c0_8] : memref<2x128x128xf32, #tpu.memory_space<vmem>>, vector<1x128x128xf32>
    %9 = vector.shape_cast %8 : vector<1x128x128xf32> to vector<128x128xf32>
    %cst_9 = arith.constant dense<0.000000e+00> : vector<256x128xf32>
    %10 = tpu.matmul %7, %9, %cst_9 {dimension_numbers = #tpu.dot_dimension_numbers<[1], [0], [0], [1], [0, 0, 1, 1], [], []>} : vector<256x128xf32>, vector<128x128xf32>, vector<256x128xf32> -> vector<256x128xf32>
    %c0_10 = arith.constant 0 : index
    %c0_11 = arith.constant 0 : index
    %c0_12 = arith.constant 0 : index
    %11 = vector.load %arg5[%c0_10, %c0_11, %c0_12] : memref<2x1x128xf32, #tpu.memory_space<vmem>>, vector<1x1x128xf32>
    %12 = vector.shape_cast %11 : vector<1x1x128xf32> to vector<1x128xf32>
    %13 = vector.broadcast %12 : vector<1x128xf32> to vector<256x128xf32>
    %14 = arith.addf %10, %13 : vector<256x128xf32>
    %cst_13 = arith.constant 0.000000e+00 : f32
    %15 = vector.broadcast %cst_13 : f32 to vector<256x128xf32>
    %16 = arith.maximumf %14, %15 : vector<256x128xf32>
    %c1 = arith.constant 1 : index
    %c0_14 = arith.constant 0 : index
    %c0_15 = arith.constant 0 : index
    %17 = vector.load %arg4[%c1, %c0_14, %c0_15] : memref<2x128x128xf32, #tpu.memory_space<vmem>>, vector<1x128x128xf32>
    %18 = vector.shape_cast %17 : vector<1x128x128xf32> to vector<128x128xf32>
    %cst_16 = arith.constant dense<0.000000e+00> : vector<256x128xf32>
    %19 = tpu.matmul %16, %18, %cst_16 {dimension_numbers = #tpu.dot_dimension_numbers<[1], [0], [0], [1], [0, 0, 1, 1], [], []>} : vector<256x128xf32>, vector<128x128xf32>, vector<256x128xf32> -> vector<256x128xf32>
    %c1_17 = arith.constant 1 : index
    %c0_18 = arith.constant 0 : index
    %c0_19 = arith.constant 0 : index
    %20 = vector.load %arg5[%c1_17, %c0_18, %c0_19] : memref<2x1x128xf32, #tpu.memory_space<vmem>>, vector<1x1x128xf32>
    %21 = vector.shape_cast %20 : vector<1x1x128xf32> to vector<1x128xf32>
    %22 = vector.broadcast %21 : vector<1x128xf32> to vector<256x128xf32>
    %23 = arith.addf %19, %22 : vector<256x128xf32>
    %cst_20 = arith.constant 0.000000e+00 : f32
    %24 = vector.broadcast %cst_20 : f32 to vector<256x128xf32>
    %25 = arith.maximumf %23, %24 : vector<256x128xf32>
    %c0_21 = arith.constant 0 : index
    %c0_22 = arith.constant 0 : index
    %26 = vector.load %arg6[%c0_21, %c0_22] : memref<128x128xf32, #tpu.memory_space<vmem>>, vector<128x128xf32>
    %cst_23 = arith.constant dense<0.000000e+00> : vector<256x128xf32>
    %27 = tpu.matmul %25, %26, %cst_23 {dimension_numbers = #tpu.dot_dimension_numbers<[1], [0], [0], [1], [0, 0, 1, 1], [], []>} : vector<256x128xf32>, vector<128x128xf32>, vector<256x128xf32> -> vector<256x128xf32>
    %c0_24 = arith.constant 0 : index
    %c0_25 = arith.constant 0 : index
    %28 = vector.load %arg7[%c0_24, %c0_25] : memref<1x128xf32, #tpu.memory_space<vmem>>, vector<1x128xf32>
    %29 = vector.broadcast %28 : vector<1x128xf32> to vector<256x128xf32>
    %30 = arith.addf %27, %29 : vector<256x128xf32>
    %31 = math.tanh %30 : vector<256x128xf32>
    %c0_26 = arith.constant 0 : index
    %c0_27 = arith.constant 0 : index
    %32 = vector.load %arg8[%c0_26, %c0_27] : memref<256x128xf32, #tpu.memory_space<vmem>>, vector<256x128xf32>
    tpu.vector_store %arg8[%c0_26, %c0_27], %31 {strides = array<i32>} : memref<256x128xf32, #tpu.memory_space<vmem>>, vector<256x128xf32>,
    return
  }
  func.func @transform_0(%arg0: i32) -> (i32, i32) {
    %c0_i32 = arith.constant 0 : i32
    %c0_i32_0 = arith.constant 0 : i32
    return %arg0, %c0_i32 : i32, i32
  }
  func.func @transform_1(%arg0: i32) -> (i32, i32) {
    %c0_i32 = arith.constant 0 : i32
    %c0_i32_0 = arith.constant 0 : i32
    %c0_i32_1 = arith.constant 0 : i32
    return %c0_i32, %c0_i32_0 : i32, i32
  }
  func.func @transform_2(%arg0: i32) -> (i32, i32) {
    %c0_i32 = arith.constant 0 : i32
    %c0_i32_0 = arith.constant 0 : i32
    %c0_i32_1 = arith.constant 0 : i32
    return %c0_i32, %c0_i32_0 : i32, i32
  }
  func.func @transform_3(%arg0: i32) -> (i32, i32, i32) {
    %c0_i32 = arith.constant 0 : i32
    %c0_i32_0 = arith.constant 0 : i32
    %c0_i32_1 = arith.constant 0 : i32
    %c0_i32_2 = arith.constant 0 : i32
    return %c0_i32, %c0_i32_0, %c0_i32_1 : i32, i32, i32
  }
  func.func @transform_4(%arg0: i32) -> (i32, i32, i32) {
    %c0_i32 = arith.constant 0 : i32
    %c0_i32_0 = arith.constant 0 : i32
    %c0_i32_1 = arith.constant 0 : i32
    %c0_i32_2 = arith.constant 0 : i32
    return %c0_i32, %c0_i32_0, %c0_i32_1 : i32, i32, i32
  }
  func.func @transform_5(%arg0: i32) -> (i32, i32) {
    %c0_i32 = arith.constant 0 : i32
    %c0_i32_0 = arith.constant 0 : i32
    %c0_i32_1 = arith.constant 0 : i32
    return %c0_i32, %c0_i32_0 : i32, i32
  }
  func.func @transform_6(%arg0: i32) -> (i32, i32) {
    %c0_i32 = arith.constant 0 : i32
    %c0_i32_0 = arith.constant 0 : i32
    %c0_i32_1 = arith.constant 0 : i32
    return %c0_i32, %c0_i32_0 : i32, i32
  }
  func.func @transform_7(%arg0: i32) -> (i32, i32) {
    %c0_i32 = arith.constant 0 : i32
    %c0_i32_0 = arith.constant 0 : i32
    return %arg0, %c0_i32 : i32, i32
  }
}

</mosaic_0001>

<bundles_post_ra>
// kernel: tpu_custom_call.1
= control target key start
LH: loop header
LB: loop body
LE: loop exit
PB: predicated region body
PF: predicated region fallthrough
CT: control target
= control target key end

     0   :  { %12 = vsyncpa [#allocation3], 0  ;;  %s3036_s0 = inlined_call_operand.vmem [shape: f32[2048,32], index: 0, kind: input, shape index: {}]   ;;  %s3037_s1 = inlined_call_operand.vmem [shape: f32[32,128], index: 1, kind: input, shape index: {}]   ;;  %s3038_s2 = inlined_call_operand.vmem [shape: f32[1,128], index: 2, kind: input, shape index: {}]   ;;  %s3039_s3 = inlined_call_operand.vmem [shape: f32[2,128,128], index: 3, kind: input, shape index: {}]   ;;  %s3040_s4 = inlined_call_operand.vmem [shape: f32[2,1,128], index: 4, kind: input, shape index: {}]   ;;  %s3041_s5 = inlined_call_operand.vmem [shape: f32[128,128], index: 5, kind: input, shape index: {}]   ;;  %s3042_s6 = inlined_call_operand.vmem [shape: f32[1,128], index: 6, kind: input, shape index: {}]   ;;  %s3043_s7 = inlined_call_operand.hbm [shape: f32[2048,128], index: 7, kind: output, shape index: {}]  }
   0x1   :  { %14 = vsyncpa [#allocation3 + $0x1], 0  ;;  %s2501_s24 = smov 0   ;;  %s2503_s25 = smov 0  }
   0x2   :  { %s2505_s26 = smov 0   ;;  %s2507_s27 = smov 0  }
   0x3 LB: > { %s2522_s28 = sadd.s32 4294967295, %s2456_s27   ;;  %s1627_s29 = sadd.s32 4294967294, %s2456_s27   ;;  %s2456_s27 = sphi %s2507_s27, %s3049_s27   ;;  %s2452_s26 = sphi %s2505_s26, %s3048_s26   ;;  %s2448_s25 = sphi %s2503_s25, %s3047_s25   ;;  %s2444_s24 = sphi %s2501_s24, %s3046_s24  }
   0x4   : > { %s2526_s30 = sadd.s32 1, %s2456_s27   ;;  %s179_s8 = sadd.s32 1, %s2452_s26 }
   0x5   : > { %s176_s9 = ssub.s32 %s2456_s27, %s2526_s30  ;;  %p189_p0 = scmp.ne.s32.totalorder %s2452_s26, %s2448_s25 }
   0x6   : > { %p177_p1 = scmp.eq.s32.totalorder %s176_s9, 0  ;;  %p190_p2 = scmp.eq.s32.totalorder %s2522_s28, 7 }
   0x7   : > { %p195_p3 = scmp.ne.s32.totalorder %s2448_s25, %s2444_s24  ;;  %p196_p4 = scmp.eq.s32.totalorder %s1627_s29, 7 }
   0x8   : > { %s2537_s10 = scalar_select %p177_p1, %s2452_s26, %s179_s8  }
   0x9   : > { %p2539_p5 = por %p190_p2, %p189_p0  ;;  %p2543_p6 = por %p196_p4, %p195_p3 }
   0xa   : > { %p1630_p7 = scmp.ge.s32.totalorder %s2456_s27, 1  ;;  %p241_p8 = scmp.lt.s32.totalorder %s2456_s27, 9 }
   0xc   : > { %p242_p9 = pnand %p1630_p7, %p241_p8 }
   0xd   : > { %v312_v0 = vld [vmem:[%s3037_s1] sm:$0xff] (!%p242_p9)  ;;  %v313_v1 = vld [vmem:[%s3037_s1 + $0x8] sm:$0xff] (!%p242_p9)  ;;  %v314_v2 = vld [vmem:[%s3037_s1 + $0x10] sm:$0xff] (!%p242_p9)  ;;  %s1632_s19 = sshll.u32 (!%p242_p9), %s2522_s28, 5  ;;  %vm323_vm0 = vcmask (!%p242_p9), 261120   ;;  %s270_s20 = sand.u32 (!%p242_p9), 1, %s2448_s25  }
   0xe   : > { %245 = sbr.rel (%p242_p9) target bundleno = 981 (0x3d5), region = 48  ;;  %v2169_v3 = vpack.c.bf16 (!%p242_p9), %v313_v1, %v312_v0  ;;  %v315_v4 = vld [vmem:[%s3037_s1 + $0x18] sm:$0xff] (!%p242_p9)  ;;  %p274_p10 = scmp.lt.s32.totalorder (!%p242_p9), %s1632_s19, 255  ;;  %v677_v5 = vld [vmem:[%s3039_s3] sm:$0xff] (!%p242_p9)  ;;  %v678_v6 = vld [vmem:[%s3039_s3 + $0x8] sm:$0xff] (!%p242_p9) }
   0xf   : > { %v2173_v7 = vpack.c.bf16 (!%p242_p9), %v315_v4, %v314_v2  ;;  %v2177_v8 = vpack.c.bf16 (!%p242_p9), %v678_v6, %v677_v5  ;;  %v679_v9 = vld [vmem:[%s3039_s3 + $0x10] sm:$0xff] (!%p242_p9)  ;;  %v680_v10 = vld [vmem:[%s3039_s3 + $0x18] sm:$0xff] (!%p242_p9)  ;;  %v681_v12 = vld [vmem:[%s3039_s3 + $0x20] sm:$0xff] (!%p242_p9)  ;;  %s1692_s22 = sshll.u32 (!%p242_p9), %s2522_s28, 12  ;;  %s2995_s28 = scalar_lea.sflag (!%p242_p9), [#allocation3], %s270_s20 }
  0x10   : > { %2170 = vmatprep.subr.bf16.mxu0 (!%p242_p9), %v2169_v3  ;;  %v2181_v11 = vpack.c.bf16 (!%p242_p9), %v680_v10, %v679_v9  ;;  %v682_v13 = vld [vmem:[%s3039_s3 + $0x28] sm:$0xff] (!%p242_p9)  ;;  %v683_v16 = vld [vmem:[%s3039_s3 + $0x30] sm:$0xff] (!%p242_p9)  ;;  %v684_v17 = vld [vmem:[%s3039_s3 + $0x38] sm:$0xff] (!%p242_p9)  ;;  %s2458_s14 = smov (!%p242_p9), [#allocation2]  }
  0x11   : > { %2172 = vmatpush3.bf16.msra.mxu0 (!%p242_p9), %v2169_v3  ;;  %2178 = vmatprep.subr.bf16.mxu1 (!%p242_p9), %v2177_v8  ;;  %v2185_v14 = vpack.c.bf16 (!%p242_p9), %v682_v13, %v681_v12  ;;  %v2189_v20 = vpack.c.bf16 (!%p242_p9), %v684_v17, %v683_v16  ;;  %v685_v21 = vld [vmem:[%s3039_s3 + $0x40] sm:$0xff] (!%p242_p9)  ;;  %v686_v22 = vld [vmem:[%s3039_s3 + $0x48] sm:$0xff] (!%p242_p9)  ;;  %v687_v26 = vld [vmem:[%s3039_s3 + $0x50] sm:$0xff] (!%p242_p9)  ;;  %s2398_s15 = sshll.u32 (!%p242_p9), %s2458_s14, 4  ;;  %s2399_s15 = int_to_ptr.vmem [resolvable:$false] %s2398_s15 }
  0x12   : > { %2174 = vmatprep.subr.bf16.mxu0 (!%p242_p9), %v2173_v7  ;;  %2180 = vmatpush3.bf16.msra.mxu1 (!%p242_p9), %v2177_v8  ;;  %v2193_v25 = vpack.c.bf16 (!%p242_p9), %v686_v22, %v685_v21  ;;  %v688_v27 = vld [vmem:[%s3039_s3 + $0x58] sm:$0xff] (!%p242_p9)  ;;  %v689_v31 = vld [vmem:[%s3039_s3 + $0x60] sm:$0xff] (!%p242_p9)  ;;  %v690_v32 = vld [vmem:[%s3039_s3 + $0x68] sm:$0xff] (!%p242_p9)  ;;  %s2400_s16 = scalar_lea.vmem (!%p242_p9), %s2399_s15, 8192 }
  0x13   : > { %2182 = vmatprep.subr.bf16.mxu1 (!%p242_p9), %v2181_v11  ;;  %v2197_v30 = vpack.c.bf16 (!%p242_p9), %v688_v27, %v687_v26  ;;  %v2201_v35 = vpack.c.bf16 (!%p242_p9), %v690_v32, %v689_v31  ;;  %v691_v59 = vld [vmem:[%s3039_s3 + $0x70] sm:$0xff] (!%p242_p9)  ;;  %v692_v60 = vld [vmem:[%s3039_s3 + $0x78] sm:$0xff] (!%p242_p9)  ;;  %v1668_v62 = vld [vmem:[%s3039_s3 + $0x80] sm:$0xff] (!%p242_p9) }
  0x14   : > { %v2205_v61 = vpack.c.bf16 (!%p242_p9), %v692_v60, %v691_v59  ;;  %v1669_v63 = vld [vmem:[%s3039_s3 + $0x88] sm:$0xff] (!%p242_p9)  ;;  %v1670_v0 = vld [vmem:[%s3039_s3 + $0x90] sm:$0xff] (!%p242_p9)  ;;  %v1671_v2 = vld [vmem:[%s3039_s3 + $0x98] sm:$0xff] (!%p242_p9) }
  0x15   : > { %s3051_s19 = smov (!%p274_p10, %s1632_s19), 255  ;;  %2176 = vmatpush3.bf16.msra.mxu0 %v2173_v7  ;;  %v2209_v1 = vpack.c.bf16 %v1669_v63, %v1668_v62  ;;  %v2213_v3 = vpack.c.bf16 %v1671_v2, %v1670_v0  ;;  %v1672_v4 = vld [vmem:[%s3039_s3 + $0xa0] sm:$0xff]  ;;  %v1673_v5 = vld [vmem:[%s3039_s3 + $0xa8] sm:$0xff]  ;;  %v1674_v7 = vld [vmem:[%s3039_s3 + $0xb0] sm:$0xff] }
  0x16   : > { %s1633_s21 = sshll.u32 %s3051_s19, 3  ;;  %2184 = vmatpush3.bf16.msra.mxu1 %v2181_v11  ;;  %v2217_v6 = vpack.c.bf16 %v1673_v5, %v1672_v4  ;;  %v1675_v8 = vld [vmem:[%s3039_s3 + $0xb8] sm:$0xff]  ;;  %v1676_v10 = vld [vmem:[%s3039_s3 + $0xc0] sm:$0xff]  ;;  %v1677_v11 = vld [vmem:[%s3039_s3 + $0xc8] sm:$0xff]  ;;  %s2987_s19 = scalar_lea.hbm %s3043_s7, %s1692_s22 }
  0x17   : > { %s2583_s29 = scalar_lea.vmem %s3036_s0, %s1633_s21  ;;  %2186 = vmatprep.subr.bf16.mxu1 %v2185_v14  ;;  %2210 = vmatprep.subr.bf16.mxu0 %v2209_v1  ;;  %v2221_v9 = vpack.c.bf16 %v1675_v8, %v1674_v7  ;;  %v2225_v12 = vpack.c.bf16 %v1677_v11, %v1676_v10  ;;  %v1678_v13 = vld [vmem:[%s3039_s3 + $0xd0] sm:$0xff]  ;;  %v1680_v16 = vld [vmem:[%s3039_s3 + $0xe0] sm:$0xff]  ;;  %v1681_v17 = vld [vmem:[%s3039_s3 + $0xe8] sm:$0xff]  ;;  %s1631_s21 = sshll.u32 %s270_s20, 8 }
  0x18   : > { %v280_v15 = vld [vmem:[%s2583_s29] sm:$0xff]  ;;  %v281_v18 = vld [vmem:[%s2583_s29 + $0x8] sm:$0xff]  ;;  %v282_v19 = vld [vmem:[%s2583_s29 + $0x10] sm:$0xff] }
  0x19   : > { %1881 = vmatprep.mubr.msk.f32.mxu0 %vm323_vm0, %v280_v15  ;;  %v283_v23 = vld [vmem:[%s2583_s29 + $0x18] sm:$0xff]  ;;  %v284_v24 = vld [vmem:[%s2583_s29 + $0x20] sm:$0xff]  ;;  %v285_v28 = vld [vmem:[%s2583_s29 + $0x28] sm:$0xff] }
  0x1a   : > { %1882 = vmatmul.mubr.msk.f32.vlgmr.msra.gmra.mrb[0].mxu0 %vm323_vm0, %v281_v18  ;;  %2188 = vmatpush3.bf16.msra.mxu1 %v2185_v14  ;;  %v286_v29 = vld [vmem:[%s2583_s29 + $0x30] sm:$0xff]  ;;  %v287_v33 = vld [vmem:[%s2583_s29 + $0x38] sm:$0xff]  ;;  %v288_v34 = vld [vmem:[%s2583_s29 + $0x40] sm:$0xff]  ;;  %v2233_v18 = vpack.c.bf16 %v1681_v17, %v1680_v16 }
  0x1b   : > { %1884 = vmatprep.mubr.msk.f32.mxu0 %vm323_vm0, %v282_v19  ;;  %2190 = vmatprep.subr.bf16.mxu1 %v2189_v20  ;;  %v289_v36 = vld [vmem:[%s2583_s29 + $0x48] sm:$0xff]  ;;  %v290_v37 = vld [vmem:[%s2583_s29 + $0x50] sm:$0xff]  ;;  %v291_v38 = vld [vmem:[%s2583_s29 + $0x58] sm:$0xff] }
  0x1c   : > { %v292_v39 = vld [vmem:[%s2583_s29 + $0x60] sm:$0xff]  ;;  %v293_v40 = vld [vmem:[%s2583_s29 + $0x68] sm:$0xff]  ;;  %v294_v41 = vld [vmem:[%s2583_s29 + $0x70] sm:$0xff]  ;;  %2212 = vmatpush3.bf16.msra.mxu0 %v2209_v1 }
  0x1d   : > { %v295_v42 = vld [vmem:[%s2583_s29 + $0x78] sm:$0xff]  ;;  %v296_v43 = vld [vmem:[%s2583_s29 + $0x80] sm:$0xff]  ;;  %v297_v44 = vld [vmem:[%s2583_s29 + $0x88] sm:$0xff]  ;;  %2214 = vmatprep.subr.bf16.mxu0 %v2213_v3 }
  0x1e   : > { %1885 = vmatmul.mubr.msk.f32.gmra.mrb[2].mxu0 %vm323_vm0, %v283_v23  ;;  %2192 = vmatpush3.bf16.msra.mxu1 %v2189_v20  ;;  %v298_v45 = vld [vmem:[%s2583_s29 + $0x90] sm:$0xff]  ;;  %v299_v46 = vld [vmem:[%s2583_s29 + $0x98] sm:$0xff]  ;;  %v300_v47 = vld [vmem:[%s2583_s29 + $0xa0] sm:$0xff] }
  0x1f   : > { %1887 = vmatprep.mubr.msk.f32.mxu0 %vm323_vm0, %v284_v24  ;;  %2194 = vmatprep.subr.bf16.mxu1 %v2193_v25  ;;  %v301_v48 = vld [vmem:[%s2583_s29 + $0xa8] sm:$0xff]  ;;  %v302_v49 = vld [vmem:[%s2583_s29 + $0xb0] sm:$0xff]  ;;  %v303_v50 = vld [vmem:[%s2583_s29 + $0xb8] sm:$0xff] }
  0x20   : > { %v304_v51 = vld [vmem:[%s2583_s29 + $0xc0] sm:$0xff]  ;;  %v305_v52 = vld [vmem:[%s2583_s29 + $0xc8] sm:$0xff]  ;;  %v306_v53 = vld [vmem:[%s2583_s29 + $0xd0] sm:$0xff]  ;;  %2216 = vmatpush3.bf16.msra.mxu0 %v2213_v3 }
  0x21   : > { %v307_v54 = vld [vmem:[%s2583_s29 + $0xd8] sm:$0xff]  ;;  %v308_v55 = vld [vmem:[%s2583_s29 + $0xe0] sm:$0xff]  ;;  %v309_v56 = vld [vmem:[%s2583_s29 + $0xe8] sm:$0xff]  ;;  %2218 = vmatprep.subr.bf16.mxu0 %v2217_v6 }
  0x22   : > { %1888 = vmatmul.mubr.msk.f32.gmra.mrb[4].mxu0 %vm323_vm0, %v285_v28  ;;  %2196 = vmatpush3.bf16.msra.mxu1 %v2193_v25  ;;  %v310_v57 = vld [vmem:[%s2583_s29 + $0xf0] sm:$0xff]  ;;  %v311_v58 = vld [vmem:[%s2583_s29 + $0xf8] sm:$0xff]  ;;  %v2730_v22 = vld [vmem:[%s3038_s2] ss:$0 sm:$0xff]  ;;  %s2925_s29 = scalar_lea.vmem [#allocation2], %s1631_s21 }
  0x23   : > { %1890 = vmatprep.mubr.msk.f32.mxu0 %vm323_vm0, %v286_v29  ;;  %2198 = vmatprep.subr.bf16.mxu1 %v2197_v30  ;;  %v1679_v14 = vld [vmem:[%s3039_s3 + $0xd8] sm:$0xff]  ;;  %v1682_v19 = vld [vmem:[%s3039_s3 + $0xf0] sm:$0xff]  ;;  %s1565_s23 = sshll.u32 %s2925_s29, 4  ;;  %s2989_s23 = int_to_ptr.vmem [resolvable:$true] %s1565_s23 }
  0x24   : > { %2220 = vmatpush3.bf16.msra.mxu0 %v2217_v6  ;;  %v2229_v15 = vpack.c.bf16 %v1679_v14, %v1678_v13  ;;  %v1683_v20 = vld [vmem:[%s3039_s3 + $0xf8] sm:$0xff]  ;;  %s2394_s13 = scalar_lea.vmem %s2989_s23, 4096  ;;  %p2401_p0 = scmp.lt.s32.totalorder %s2989_s23, %s2399_s15 }
  0x25   : > { %2222 = vmatprep.subr.bf16.mxu0 %v2221_v9  ;;  %v2237_v21 = vpack.c.bf16 %v1683_v20, %v1682_v19  ;;  %p2395_p11 = scmp.ne.s32.totalorder %s2989_s23, %s2394_s13  ;;  %p2402_p1 = scmp.lt.s32.totalorder %s2400_s16, %s2394_s13 }
  0x26   : > { %1891 = vmatmul.mubr.msk.f32.gmra.mrb[6].mxu0 %vm323_vm0, %v287_v33  ;;  %2200 = vmatpush3.bf16.msra.mxu1 %v2197_v30 }
  0x27   : > { %1893 = vmatprep.mubr.msk.f32.mxu0 %vm323_vm0, %v288_v34  ;;  %2202 = vmatprep.subr.bf16.mxu1 %v2201_v35  ;;  %p2396_p12 = pnand %p2395_p11, %p2539_p5  ;;  %p2403_p2 = por %p2402_p1, %p2401_p0 }
  0x28   : > { %2224 = vmatpush3.bf16.msra.mxu0 %v2221_v9 }
  0x29   : > { %2226 = vmatprep.subr.bf16.mxu0 %v2225_v12  ;;  %p2397_p13 = pneg %p2396_p12 }
  0x2a   : > { %1894 = vmatmul.mubr.msk.f32.gmra.mrb[8].mxu0 %vm323_vm0, %v289_v36  ;;  %2204 = vmatpush3.bf16.msra.mxu1 %v2201_v35 }
  0x2b   : > { %1896 = vmatprep.mubr.msk.f32.mxu0 %vm323_vm0, %v290_v37  ;;  %2206 = vmatprep.subr.bf16.mxu1 %v2205_v61  ;;  %p2404_p3 = pnand %p2403_p2, %p2397_p13 }
  0x2c   : > { %2228 = vmatpush3.bf16.msra.mxu0 %v2225_v12 }
  0x2d   : > { %2230 = vmatprep.subr.bf16.mxu0 %v2229_v15 }
  0x2e   : > { %1897 = vmatmul.mubr.msk.f32.gmra.mrb[10].mxu0 %vm323_vm0, %v291_v38  ;;  %2208 = vmatpush3.bf16.msra.mxu1 %v2205_v61 }
  0x2f   : > { %1899 = vmatprep.mubr.msk.f32.mxu0 %vm323_vm0, %v292_v39 }
  0x30   : > { %2232 = vmatpush3.bf16.msra.mxu0 %v2229_v15 }
  0x31   : > { %2234 = vmatprep.subr.bf16.mxu0 %v2233_v18 }
  0x32   : > { %1900 = vmatmul.mubr.msk.f32.gmra.mrb[12].mxu0 %vm323_vm0, %v293_v40 }
  0x33   : > { %1902 = vmatprep.mubr.msk.f32.mxu0 %vm323_vm0, %v294_v41 }
  0x34   : > { %2236 = vmatpush3.bf16.msra.mxu0 %v2233_v18 }
  0x35   : > { %2238 = vmatprep.subr.bf16.mxu0 %v2237_v21 }
  0x36   : > { %1903 = vmatmul.mubr.msk.f32.gmra.mrb[14].mxu0 %vm323_vm0, %v295_v42 }
  0x37   : > { %1905 = vmatprep.mubr.msk.f32.mxu0 %vm323_vm0, %v296_v43 }
  0x38   : > { %2240 = vmatpush3.bf16.msra.mxu0 %v2237_v21 }
  0x3a   : > { %1906 = vmatmul.mubr.msk.f32.gmra.mrb[16].mxu0 %vm323_vm0, %v297_v44 }
  0x3b   : > { %1908 = vmatprep.mubr.msk.f32.mxu0 %vm323_vm0, %v298_v45 }
  0x3e   : > { %1909 = vmatmul.mubr.msk.f32.gmra.mrb[18].mxu0 %vm323_vm0, %v299_v46 }
  0x3f   : > { %1911 = vmatprep.mubr.msk.f32.mxu0 %vm323_vm0, %v300_v47 }
  0x42   : > { %1912 = vmatmul.mubr.msk.f32.gmra.mrb[20].mxu0 %vm323_vm0, %v301_v48 }
  0x43   : > { %1914 = vmatprep.mubr.msk.f32.mxu0 %vm323_vm0, %v302_v49 }
  0x46   : > { %1915 = vmatmul.mubr.msk.f32.gmra.mrb[22].mxu0 %vm323_vm0, %v303_v50 }
  0x47   : > { %1917 = vmatprep.mubr.msk.f32.mxu0 %vm323_vm0, %v304_v51 }
  0x4a   : > { %1918 = vmatmul.mubr.msk.f32.gmra.mrb[24].mxu0 %vm323_vm0, %v305_v52 }
  0x4b   : > { %1920 = vmatprep.mubr.msk.f32.mxu0 %vm323_vm0, %v306_v53 }
  0x4e   : > { %1921 = vmatmul.mubr.msk.f32.gmra.mrb[26].mxu0 %vm323_vm0, %v307_v54 }
  0x4f   : > { %1923 = vmatprep.mubr.msk.f32.mxu0 %vm323_vm0, %v308_v55 }
  0x52   : > { %1924 = vmatmul.mubr.msk.f32.gmra.mrb[28].mxu0 %vm323_vm0, %v309_v56 }
  0x53   : > { %1926 = vmatprep.mubr.msk.f32.mxu0 %vm323_vm0, %v310_v57 }
  0x56   : > { %1927 = vmatmul.mubr.msk.f32.gmra.mrb[30].mxu0 %vm323_vm0, %v311_v58 }
  0xed   : > { %v1883_v23 = vpop.f32.mrb[0].mxu0 }
  0xee   : > { %v492_v24 = vadd.f32 %v1883_v23, %v2730_v22  ;;  %v486_v25 = vpop.f32.mrb[1].mxu0 }
  0xef   : > { %v487_v26 = vadd.f32 %v2730_v22, %v486_v25 }
  0xf0   : > { %v646_v29 = vmax.f32 %v492_v24, 0.0 }
  0xf1   : > { %v1886_v27 = vpop.f32.mrb[2].mxu0  ;;  %v645_v28 = vmax.f32 %v487_v26, 0.0 }
  0xf2   : > { %v502_v30 = vadd.f32 %v1886_v27, %v2730_v22  ;;  %v496_v31 = vpop.f32.mrb[3].mxu0 }
  0xf3   : > { %v497_v32 = vadd.f32 %v2730_v22, %v496_v31  ;;  %1961 = vmatprep.mubr.f32.mxu1 %v645_v28 }
  0xf4   : > { %1962 = vmatmul.mubr.f32.vlgmr.msra.gmra.mrb[0].mxu1 %v646_v29  ;;  %v648_v35 = vmax.f32 %v502_v30, 0.0 }
  0xf5   : > { %v647_v33 = vmax.f32 %v497_v32, 0.0  ;;  %v1889_v34 = vpop.f32.mrb[4].mxu0 }
  0xf6   : > { %v512_v36 = vadd.f32 %v1889_v34, %v2730_v22  ;;  %v506_v37 = vpop.f32.mrb[5].mxu0 }
  0xf7   : > { %v507_v38 = vadd.f32 %v2730_v22, %v506_v37  ;;  %1964 = vmatprep.mubr.f32.mxu1 %v647_v33 }
  0xf8   : > { %1965 = vmatmul.mubr.f32.gmra.mrb[2].mxu1 %v648_v35  ;;  %v650_v41 = vmax.f32 %v512_v36, 0.0 }
  0xf9   : > { %v649_v39 = vmax.f32 %v507_v38, 0.0  ;;  %v1892_v40 = vpop.f32.mrb[6].mxu0 }
  0xfa   : > { %v522_v42 = vadd.f32 %v1892_v40, %v2730_v22  ;;  %v516_v43 = vpop.f32.mrb[7].mxu0 }
  0xfb   : > { %v517_v44 = vadd.f32 %v2730_v22, %v516_v43  ;;  %1967 = vmatprep.mubr.f32.mxu1 %v649_v39 }
  0xfc   : > { %1968 = vmatmul.mubr.f32.gmra.mrb[4].mxu1 %v650_v41  ;;  %v652_v47 = vmax.f32 %v522_v42, 0.0 }
  0xfd   : > { %v651_v45 = vmax.f32 %v517_v44, 0.0  ;;  %v1895_v46 = vpop.f32.mrb[8].mxu0 }
  0xfe   : > { %v532_v48 = vadd.f32 %v1895_v46, %v2730_v22  ;;  %v526_v49 = vpop.f32.mrb[9].mxu0 }
  0xff   : > { %v527_v50 = vadd.f32 %v2730_v22, %v526_v49  ;;  %1970 = vmatprep.mubr.f32.mxu1 %v651_v45 }
 0x100   : > { %1971 = vmatmul.mubr.f32.gmra.mrb[6].mxu1 %v652_v47  ;;  %v654_v53 = vmax.f32 %v532_v48, 0.0 }
 0x101   : > { %v653_v51 = vmax.f32 %v527_v50, 0.0  ;;  %v1898_v52 = vpop.f32.mrb[10].mxu0 }
 0x102   : > { %v542_v54 = vadd.f32 %v1898_v52, %v2730_v22  ;;  %v536_v55 = vpop.f32.mrb[11].mxu0 }
 0x103   : > { %v537_v56 = vadd.f32 %v2730_v22, %v536_v55  ;;  %1973 = vmatprep.mubr.f32.mxu1 %v653_v51 }
 0x104   : > { %1974 = vmatmul.mubr.f32.gmra.mrb[8].mxu1 %v654_v53  ;;  %v656_v59 = vmax.f32 %v542_v54, 0.0 }
 0x105   : > { %v655_v57 = vmax.f32 %v537_v56, 0.0  ;;  %v1901_v58 = vpop.f32.mrb[12].mxu0  ;;  %v1239_v56 = vld [vmem:[%s3041_s5] sm:$0xff] }
 0x106   : > { %v552_v60 = vadd.f32 %v1901_v58, %v2730_v22  ;;  %v546_v61 = vpop.f32.mrb[13].mxu0  ;;  %v1241_v58 = vld [vmem:[%s3041_s5 + $0x10] sm:$0xff] }
 0x107   : > { %v547_v62 = vadd.f32 %v2730_v22, %v546_v61  ;;  %1976 = vmatprep.mubr.f32.mxu1 %v655_v57  ;;  %v1240_v57 = vld [vmem:[%s3041_s5 + $0x8] sm:$0xff]  ;;  %v1243_v61 = vld [vmem:[%s3041_s5 + $0x20] sm:$0xff] }
 0x108   : > { %1977 = vmatmul.mubr.f32.gmra.mrb[10].mxu1 %v656_v59  ;;  %v658_v1 = vmax.f32 %v552_v60, 0.0  ;;  %v2241_v59 = vpack.c.bf16 %v1240_v57, %v1239_v56 }
 0x109   : > { %v657_v63 = vmax.f32 %v547_v62, 0.0  ;;  %v1904_v0 = vpop.f32.mrb[14].mxu0  ;;  %v1244_v62 = vld [vmem:[%s3041_s5 + $0x28] sm:$0xff] }
 0x10a   : > { %v562_v2 = vadd.f32 %v1904_v0, %v2730_v22  ;;  %v556_v3 = vpop.f32.mrb[15].mxu0  ;;  %2273 = vmatprep.subr.bf16.mxu1 %v2241_v59  ;;  %2242 = vmatprep.subr.bf16.mxu0 %v2241_v59  ;;  %v1245_v0 = vld [vmem:[%s3041_s5 + $0x30] sm:$0xff] }
 0x10b   : > { %v557_v4 = vadd.f32 %v2730_v22, %v556_v3  ;;  %1979 = vmatprep.mubr.f32.mxu1 %v657_v63  ;;  %2281 = vmatpush3.bf16.msra.mxu1 %v2241_v59  ;;  %v2249_v63 = vpack.c.bf16 %v1244_v62, %v1243_v61  ;;  %v1247_v3 = vld [vmem:[%s3041_s5 + $0x40] sm:$0xff] }
 0x10c   : > { %1980 = vmatmul.mubr.f32.gmra.mrb[12].mxu1 %v658_v1  ;;  %v660_v7 = vmax.f32 %v562_v2, 0.0  ;;  %v1246_v1 = vld [vmem:[%s3041_s5 + $0x38] sm:$0xff] }
 0x10d   : > { %v659_v5 = vmax.f32 %v557_v4, 0.0  ;;  %v1907_v6 = vpop.f32.mrb[16].mxu0  ;;  %v2788_v2 = vpack.c.bf16 %v1246_v1, %v1245_v0  ;;  %v1248_v4 = vld [vmem:[%s3041_s5 + $0x48] sm:$0xff] }
 0x10e   : > { %v572_v8 = vadd.f32 %v1907_v6, %v2730_v22  ;;  %v566_v9 = vpop.f32.mrb[17].mxu0  ;;  %v1249_v6 = vld [vmem:[%s3041_s5 + $0x50] sm:$0xff] }
 0x10f   : > { %v567_v10 = vadd.f32 %v2730_v22, %v566_v9  ;;  %1982 = vmatprep.mubr.f32.mxu1 %v659_v5  ;;  %v2797_v5 = vpack.c.bf16 %v1248_v4, %v1247_v3  ;;  %v1251_v9 = vld [vmem:[%s3041_s5 + $0x60] sm:$0xff] }
 0x110   : > { %1983 = vmatmul.mubr.f32.gmra.mrb[14].mxu1 %v660_v7  ;;  %v662_v13 = vmax.f32 %v572_v8, 0.0  ;;  %v1250_v7 = vld [vmem:[%s3041_s5 + $0x58] sm:$0xff] }
 0x111   : > { %v661_v11 = vmax.f32 %v567_v10, 0.0  ;;  %v1910_v12 = vpop.f32.mrb[18].mxu0  ;;  %v2807_v8 = vpack.c.bf16 %v1250_v7, %v1249_v6  ;;  %v1252_v10 = vld [vmem:[%s3041_s5 + $0x68] sm:$0xff] }
 0x112   : > { %v582_v14 = vadd.f32 %v1910_v12, %v2730_v22  ;;  %v576_v15 = vpop.f32.mrb[19].mxu0  ;;  %v2825_v12 = vld [vmem:[%s3040_s4] ss:$0 sm:$0xff] }
 0x113   : > { %v577_v16 = vadd.f32 %v2730_v22, %v576_v15  ;;  %1985 = vmatprep.mubr.f32.mxu1 %v661_v11  ;;  %v2817_v11 = vpack.c.bf16 %v1252_v10, %v1251_v9 }
 0x114   : > { %1986 = vmatmul.mubr.f32.gmra.mrb[16].mxu1 %v662_v13  ;;  %v664_v19 = vmax.f32 %v582_v14, 0.0 }
 0x115   : > { %v663_v17 = vmax.f32 %v577_v16, 0.0  ;;  %v1913_v18 = vpop.f32.mrb[20].mxu0 }
 0x116   : > { %v592_v20 = vadd.f32 %v1913_v18, %v2730_v22  ;;  %v586_v21 = vpop.f32.mrb[21].mxu0 }
 0x117   : > { %v587_v23 = vadd.f32 %v2730_v22, %v586_v21  ;;  %1988 = vmatprep.mubr.f32.mxu1 %v663_v17 }
 0x118   : > { %1989 = vmatmul.mubr.f32.gmra.mrb[18].mxu1 %v664_v19  ;;  %v666_v26 = vmax.f32 %v592_v20, 0.0 }
 0x119   : > { %v665_v24 = vmax.f32 %v587_v23, 0.0  ;;  %v1916_v25 = vpop.f32.mrb[22].mxu0 }
 0x11a   : > { %v602_v27 = vadd.f32 %v1916_v25, %v2730_v22  ;;  %v596_v28 = vpop.f32.mrb[23].mxu0 }
 0x11b   : > { %v597_v29 = vadd.f32 %v2730_v22, %v596_v28  ;;  %1991 = vmatprep.mubr.f32.mxu1 %v665_v24 }
 0x11c   : > { %1992 = vmatmul.mubr.f32.gmra.mrb[20].mxu1 %v666_v26  ;;  %v668_v32 = vmax.f32 %v602_v27, 0.0 }
 0x11d   : > { %v667_v30 = vmax.f32 %v597_v29, 0.0  ;;  %v1919_v31 = vpop.f32.mrb[24].mxu0 }
 0x11e   : > { %v612_v33 = vadd.f32 %v1919_v31, %v2730_v22  ;;  %v606_v34 = vpop.f32.mrb[25].mxu0 }
 0x11f   : > { %v607_v35 = vadd.f32 %v2730_v22, %v606_v34  ;;  %1994 = vmatprep.mubr.f32.mxu1 %v667_v30 }
 0x120   : > { %1995 = vmatmul.mubr.f32.gmra.mrb[22].mxu1 %v668_v32  ;;  %v670_v38 = vmax.f32 %v612_v33, 0.0 }
 0x121   : > { %v669_v36 = vmax.f32 %v607_v35, 0.0  ;;  %v1922_v37 = vpop.f32.mrb[26].mxu0 }
 0x122   : > { %v622_v39 = vadd.f32 %v1922_v37, %v2730_v22  ;;  %v616_v40 = vpop.f32.mrb[27].mxu0 }
 0x123   : > { %v617_v41 = vadd.f32 %v2730_v22, %v616_v40  ;;  %1997 = vmatprep.mubr.f32.mxu1 %v669_v36 }
 0x124   : > { %1998 = vmatmul.mubr.f32.gmra.mrb[24].mxu1 %v670_v38  ;;  %v672_v44 = vmax.f32 %v622_v39, 0.0 }
 0x125   : > { %v671_v42 = vmax.f32 %v617_v41, 0.0  ;;  %v1925_v43 = vpop.f32.mrb[28].mxu0 }
 0x126   : > { %v632_v45 = vadd.f32 %v1925_v43, %v2730_v22  ;;  %v626_v46 = vpop.f32.mrb[29].mxu0 }
 0x127   : > { %v627_v47 = vadd.f32 %v2730_v22, %v626_v46  ;;  %2000 = vmatprep.mubr.f32.mxu1 %v671_v42 }
 0x128   : > { %2001 = vmatmul.mubr.f32.gmra.mrb[26].mxu1 %v672_v44  ;;  %v674_v50 = vmax.f32 %v632_v45, 0.0 }
 0x129   : > { %v673_v48 = vmax.f32 %v627_v47, 0.0  ;;  %v1928_v49 = vpop.f32.mrb[30].mxu0 }
 0x12a   : > { %v642_v51 = vadd.f32 %v1928_v49, %v2730_v22  ;;  %v636_v52 = vpop.f32.mrb[31].mxu0 }
 0x12b   : > { %v637_v53 = vadd.f32 %v2730_v22, %v636_v52  ;;  %2003 = vmatprep.mubr.f32.mxu1 %v673_v48  ;;  %v1242_v22 = vld [vmem:[%s3041_s5 + $0x18] sm:$0xff] }
 0x12c   : > { %2004 = vmatmul.mubr.f32.gmra.mrb[28].mxu1 %v674_v50  ;;  %v676_v55 = vmax.f32 %v642_v51, 0.0  ;;  %v2245_v60 = vpack.c.bf16 %v1242_v22, %v1241_v58 }
 0x12d   : > { %v675_v54 = vmax.f32 %v637_v53, 0.0 }
 0x12e   : > { %2274 = vmatprep.subr.bf16.mxu1 %v2245_v60 }
 0x12f   : > { %2006 = vmatprep.mubr.f32.mxu1 %v675_v54  ;;  %2282 = vmatpush3.bf16.msra.mxu1 %v2245_v60 }
 0x130   : > { %2007 = vmatmul.mubr.f32.gmra.mrb[30].mxu1 %v676_v55  ;;  %2275 = vmatprep.subr.bf16.mxu1 %v2249_v63 }
 0x133   : > { %2283 = vmatpush3.bf16.msra.mxu1 %v2249_v63 }
 0x134   : > { %2276 = vmatprep.subr.bf16.mxu1 %v2788_v2 }
 0x137   : > { %2284 = vmatpush3.bf16.msra.mxu1 %v2788_v2 }
 0x138   : > { %2277 = vmatprep.subr.bf16.mxu1 %v2797_v5 }
 0x13b   : > { %2285 = vmatpush3.bf16.msra.mxu1 %v2797_v5 }
 0x13c   : > { %2278 = vmatprep.subr.bf16.mxu1 %v2807_v8 }
 0x13f   : > { %2286 = vmatpush3.bf16.msra.mxu1 %v2807_v8 }
 0x140   : > { %2279 = vmatprep.subr.bf16.mxu1 %v2817_v11 }
 0x143   : > { %2287 = vmatpush3.bf16.msra.mxu1 %v2817_v11 }
 0x1c7   : > { %v1963_v13 = vpop.f32.mrb[0].mxu1 }
 0x1c8   : > { %v772_v14 = vadd.f32 %v1963_v13, %v2825_v12  ;;  %v766_v15 = vpop.f32.mrb[1].mxu1 }
 0x1c9   : > { %v767_v16 = vadd.f32 %v2825_v12, %v766_v15 }
 0x1ca   : > { %v926_v19 = vmax.f32 %v772_v14, 0.0 }
 0x1cb   : > { %v925_v17 = vmax.f32 %v767_v16, 0.0  ;;  %v1966_v18 = vpop.f32.mrb[2].mxu1 }
 0x1cc   : > { %v782_v20 = vadd.f32 %v1966_v18, %v2825_v12  ;;  %v776_v21 = vpop.f32.mrb[3].mxu1 }
 0x1cd   : > { %v777_v23 = vadd.f32 %v2825_v12, %v776_v21  ;;  %2041 = vmatprep.mubr.f32.mxu0 %v925_v17 }
 0x1ce   : > { %2042 = vmatmul.mubr.f32.vlgmr.msra.gmra.mrb[32].mxu0 %v926_v19  ;;  %v928_v26 = vmax.f32 %v782_v20, 0.0 }
 0x1cf   : > { %v927_v24 = vmax.f32 %v777_v23, 0.0  ;;  %v1969_v25 = vpop.f32.mrb[4].mxu1  ;;  %2244 = vmatpush3.bf16.msra.mxu0 %v2241_v59 }
 0x1d0   : > { %v792_v27 = vadd.f32 %v1969_v25, %v2825_v12  ;;  %v786_v28 = vpop.f32.mrb[5].mxu1  ;;  %2246 = vmatprep.subr.bf16.mxu0 %v2245_v60 }
 0x1d1   : > { %v787_v29 = vadd.f32 %v2825_v12, %v786_v28  ;;  %2044 = vmatprep.mubr.f32.mxu0 %v927_v24 }
 0x1d2   : > { %2045 = vmatmul.mubr.f32.gmra.mrb[34].mxu0 %v928_v26  ;;  %v930_v32 = vmax.f32 %v792_v27, 0.0 }
 0x1d3   : > { %v929_v30 = vmax.f32 %v787_v29, 0.0  ;;  %v1972_v31 = vpop.f32.mrb[6].mxu1  ;;  %2248 = vmatpush3.bf16.msra.mxu0 %v2245_v60 }
 0x1d4   : > { %v802_v33 = vadd.f32 %v1972_v31, %v2825_v12  ;;  %v796_v34 = vpop.f32.mrb[7].mxu1  ;;  %2250 = vmatprep.subr.bf16.mxu0 %v2249_v63 }
 0x1d5   : > { %v797_v35 = vadd.f32 %v2825_v12, %v796_v34  ;;  %2047 = vmatprep.mubr.f32.mxu0 %v929_v30 }
 0x1d6   : > { %2048 = vmatmul.mubr.f32.gmra.mrb[36].mxu0 %v930_v32  ;;  %v932_v38 = vmax.f32 %v802_v33, 0.0 }
 0x1d7   : > { %v931_v36 = vmax.f32 %v797_v35, 0.0  ;;  %v1975_v37 = vpop.f32.mrb[8].mxu1  ;;  %2252 = vmatpush3.bf16.msra.mxu0 %v2249_v63 }
 0x1d8   : > { %v812_v39 = vadd.f32 %v1975_v37, %v2825_v12  ;;  %v806_v40 = vpop.f32.mrb[9].mxu1  ;;  %2254 = vmatprep.subr.bf16.mxu0 %v2788_v2 }
 0x1d9   : > { %v807_v41 = vadd.f32 %v2825_v12, %v806_v40  ;;  %2050 = vmatprep.mubr.f32.mxu0 %v931_v36 }
 0x1da   : > { %2051 = vmatmul.mubr.f32.gmra.mrb[38].mxu0 %v932_v38  ;;  %v934_v44 = vmax.f32 %v812_v39, 0.0 }
 0x1db   : > { %v933_v42 = vmax.f32 %v807_v41, 0.0  ;;  %v1978_v43 = vpop.f32.mrb[10].mxu1  ;;  %2256 = vmatpush3.bf16.msra.mxu0 %v2788_v2 }
 0x1dc   : > { %v822_v45 = vadd.f32 %v1978_v43, %v2825_v12  ;;  %v816_v46 = vpop.f32.mrb[11].mxu1  ;;  %2258 = vmatprep.subr.bf16.mxu0 %v2797_v5 }
 0x1dd   : > { %v817_v47 = vadd.f32 %v2825_v12, %v816_v46  ;;  %2053 = vmatprep.mubr.f32.mxu0 %v933_v42 }
 0x1de   : > { %2054 = vmatmul.mubr.f32.gmra.mrb[40].mxu0 %v934_v44  ;;  %v936_v50 = vmax.f32 %v822_v45, 0.0 }
 0x1df   : > { %v935_v48 = vmax.f32 %v817_v47, 0.0  ;;  %v1981_v49 = vpop.f32.mrb[12].mxu1  ;;  %2260 = vmatpush3.bf16.msra.mxu0 %v2797_v5  ;;  %v1253_v47 = vld [vmem:[%s3041_s5 + $0x70] sm:$0xff] }
 0x1e0   : > { %v832_v51 = vadd.f32 %v1981_v49, %v2825_v12  ;;  %v826_v52 = vpop.f32.mrb[13].mxu1  ;;  %2262 = vmatprep.subr.bf16.mxu0 %v2807_v8 }
 0x1e1   : > { %v827_v53 = vadd.f32 %v2825_v12, %v826_v52  ;;  %2056 = vmatprep.mubr.f32.mxu0 %v935_v48  ;;  %v1254_v48 = vld [vmem:[%s3041_s5 + $0x78] sm:$0xff] }
 0x1e2   : > { %2057 = vmatmul.mubr.f32.gmra.mrb[42].mxu0 %v936_v50  ;;  %v938_v56 = vmax.f32 %v832_v51, 0.0  ;;  %v2269_v49 = vpack.c.bf16 %v1254_v48, %v1253_v47 }
 0x1e3   : > { %v937_v54 = vmax.f32 %v827_v53, 0.0  ;;  %v1984_v55 = vpop.f32.mrb[14].mxu1  ;;  %2264 = vmatpush3.bf16.msra.mxu0 %v2807_v8 }
 0x1e4   : > { %v842_v57 = vadd.f32 %v1984_v55, %v2825_v12  ;;  %v836_v58 = vpop.f32.mrb[15].mxu1  ;;  %2266 = vmatprep.subr.bf16.mxu0 %v2817_v11  ;;  %2280 = vmatprep.subr.bf16.mxu1 %v2269_v49 }
 0x1e5   : > { %v837_v59 = vadd.f32 %v2825_v12, %v836_v58  ;;  %2059 = vmatprep.mubr.f32.mxu0 %v937_v54  ;;  %2288 = vmatpush3.bf16.msra.mxu1 %v2269_v49 }
 0x1e6   : > { %2060 = vmatmul.mubr.f32.gmra.mrb[44].mxu0 %v938_v56  ;;  %v940_v61 = vmax.f32 %v842_v57, 0.0 }
 0x1e7   : > { %v939_v22 = vmax.f32 %v837_v59, 0.0  ;;  %v1987_v60 = vpop.f32.mrb[16].mxu1  ;;  %2268 = vmatpush3.bf16.msra.mxu0 %v2817_v11 }
 0x1e8   : > { %v852_v62 = vadd.f32 %v1987_v60, %v2825_v12  ;;  %v846_v63 = vpop.f32.mrb[17].mxu1  ;;  %2270 = vmatprep.subr.bf16.mxu0 %v2269_v49 }
 0x1e9   : > { %v847_v0 = vadd.f32 %v2825_v12, %v846_v63  ;;  %2062 = vmatprep.mubr.f32.mxu0 %v939_v22 }
 0x1ea   : > { %2063 = vmatmul.mubr.f32.gmra.mrb[46].mxu0 %v940_v61  ;;  %v942_v3 = vmax.f32 %v852_v62, 0.0 }
 0x1eb   : > { %v941_v1 = vmax.f32 %v847_v0, 0.0  ;;  %v1990_v2 = vpop.f32.mrb[18].mxu1  ;;  %2272 = vmatpush3.bf16.msra.mxu0 %v2269_v49 }
 0x1ec   : > { %v862_v4 = vadd.f32 %v1990_v2, %v2825_v12  ;;  %v856_v5 = vpop.f32.mrb[19].mxu1 }
 0x1ed   : > { %v857_v6 = vadd.f32 %v2825_v12, %v856_v5  ;;  %2065 = vmatprep.mubr.f32.mxu0 %v941_v1 }
 0x1ee   : > { %2066 = vmatmul.mubr.f32.gmra.mrb[48].mxu0 %v942_v3  ;;  %v944_v9 = vmax.f32 %v862_v4, 0.0 }
 0x1ef   : > { %v943_v7 = vmax.f32 %v857_v6, 0.0  ;;  %v1993_v8 = vpop.f32.mrb[20].mxu1 }
 0x1f0   : > { %v872_v10 = vadd.f32 %v1993_v8, %v2825_v12  ;;  %v866_v11 = vpop.f32.mrb[21].mxu1 }
 0x1f1   : > { %v867_v13 = vadd.f32 %v2825_v12, %v866_v11  ;;  %2068 = vmatprep.mubr.f32.mxu0 %v943_v7 }
 0x1f2   : > { %2069 = vmatmul.mubr.f32.gmra.mrb[50].mxu0 %v944_v9  ;;  %v946_v16 = vmax.f32 %v872_v10, 0.0 }
 0x1f3   : > { %v945_v14 = vmax.f32 %v867_v13, 0.0  ;;  %v1996_v15 = vpop.f32.mrb[22].mxu1 }
 0x1f4   : > { %v882_v17 = vadd.f32 %v1996_v15, %v2825_v12  ;;  %v876_v18 = vpop.f32.mrb[23].mxu1 }
 0x1f5   : > { %v877_v19 = vadd.f32 %v2825_v12, %v876_v18  ;;  %2071 = vmatprep.mubr.f32.mxu0 %v945_v14 }
 0x1f6   : > { %2072 = vmatmul.mubr.f32.gmra.mrb[52].mxu0 %v946_v16  ;;  %v948_v23 = vmax.f32 %v882_v17, 0.0 }
 0x1f7   : > { %v947_v20 = vmax.f32 %v877_v19, 0.0  ;;  %v1999_v21 = vpop.f32.mrb[24].mxu1 }
 0x1f8   : > { %v892_v24 = vadd.f32 %v1999_v21, %v2825_v12  ;;  %v886_v25 = vpop.f32.mrb[25].mxu1 }
 0x1f9   : > { %v887_v26 = vadd.f32 %v2825_v12, %v886_v25  ;;  %2074 = vmatprep.mubr.f32.mxu0 %v947_v20 }
 0x1fa   : > { %2075 = vmatmul.mubr.f32.gmra.mrb[54].mxu0 %v948_v23  ;;  %v950_v29 = vmax.f32 %v892_v24, 0.0 }
 0x1fb   : > { %v949_v27 = vmax.f32 %v887_v26, 0.0  ;;  %v2002_v28 = vpop.f32.mrb[26].mxu1 }
 0x1fc   : > { %v902_v30 = vadd.f32 %v2002_v28, %v2825_v12  ;;  %v896_v31 = vpop.f32.mrb[27].mxu1 }
 0x1fd   : > { %v897_v32 = vadd.f32 %v2825_v12, %v896_v31  ;;  %2077 = vmatprep.mubr.f32.mxu0 %v949_v27 }
 0x1fe   : > { %2078 = vmatmul.mubr.f32.gmra.mrb[56].mxu0 %v950_v29  ;;  %v952_v35 = vmax.f32 %v902_v30, 0.0 }
 0x1ff   : > { %v951_v33 = vmax.f32 %v897_v32, 0.0  ;;  %v2005_v34 = vpop.f32.mrb[28].mxu1 }
 0x200   : > { %v912_v36 = vadd.f32 %v2005_v34, %v2825_v12  ;;  %v906_v37 = vpop.f32.mrb[29].mxu1 }
 0x201   : > { %v907_v38 = vadd.f32 %v2825_v12, %v906_v37  ;;  %2080 = vmatprep.mubr.f32.mxu0 %v951_v33 }
 0x202   : > { %2081 = vmatmul.mubr.f32.gmra.mrb[58].mxu0 %v952_v35  ;;  %v954_v41 = vmax.f32 %v912_v36, 0.0 }
 0x203   : > { %v953_v39 = vmax.f32 %v907_v38, 0.0  ;;  %v2008_v40 = vpop.f32.mrb[30].mxu1 }
 0x204   : > { %v922_v42 = vadd.f32 %v2008_v40, %v2825_v12  ;;  %v916_v43 = vpop.f32.mrb[31].mxu1 }
 0x205   : > { %v917_v44 = vadd.f32 %v2825_v12, %v916_v43  ;;  %2083 = vmatprep.mubr.f32.mxu0 %v953_v39  ;;  %v2876_v12 = vld [vmem:[%s3040_s4 + $0x1] ss:$0 sm:$0xff] }
 0x206   : > { %2084 = vmatmul.mubr.f32.gmra.mrb[60].mxu0 %v954_v41  ;;  %v956_v46 = vmax.f32 %v922_v42, 0.0 }
 0x207   : > { %v955_v45 = vmax.f32 %v917_v44, 0.0 }
 0x209   : > { %2086 = vmatprep.mubr.f32.mxu0 %v955_v45 }
 0x20a   : > { %2087 = vmatmul.mubr.f32.gmra.mrb[62].mxu0 %v956_v46 }
 0x2a1   : > { %v2043_v50 = vpop.f32.mrb[32].mxu0 }
 0x2a2   : > { %v1054_v51 = vadd.f32 %v2043_v50, %v2876_v12  ;;  %v1048_v52 = vpop.f32.mrb[33].mxu0 }
 0x2a3   : > { %v1049_v53 = vadd.f32 %v2876_v12, %v1048_v52 }
 0x2a4   : > { %v1208_v56 = vmax.f32 %v1054_v51, 0.0 }
 0x2a5   : > { %v1207_v54 = vmax.f32 %v1049_v53, 0.0  ;;  %v2046_v55 = vpop.f32.mrb[34].mxu0 }
 0x2a6   : > { %v1064_v57 = vadd.f32 %v2046_v55, %v2876_v12  ;;  %v1058_v58 = vpop.f32.mrb[35].mxu0 }
 0x2a7   : > { %v1059_v59 = vadd.f32 %v2876_v12, %v1058_v58  ;;  %2121 = vmatprep.mubr.f32.mxu0 %v1207_v54 }
 0x2a8   : > { %2122 = vmatmul.mubr.f32.vlgmr.msra.gmra.mrb[64].mxu0 %v1208_v56  ;;  %v1210_v61 = vmax.f32 %v1064_v57, 0.0 }
 0x2a9   : > { %v1209_v22 = vmax.f32 %v1059_v59, 0.0  ;;  %v2049_v60 = vpop.f32.mrb[36].mxu0 }
 0x2aa   : > { %v1074_v62 = vadd.f32 %v2049_v60, %v2876_v12  ;;  %v1068_v63 = vpop.f32.mrb[37].mxu0 }
 0x2ab   : > { %v1069_v0 = vadd.f32 %v2876_v12, %v1068_v63  ;;  %2124 = vmatprep.mubr.f32.mxu0 %v1209_v22 }
 0x2ac   : > { %2125 = vmatmul.mubr.f32.gmra.mrb[66].mxu0 %v1210_v61  ;;  %v1212_v3 = vmax.f32 %v1074_v62, 0.0 }
 0x2ad   : > { %v1211_v1 = vmax.f32 %v1069_v0, 0.0  ;;  %v2052_v2 = vpop.f32.mrb[38].mxu0 }
 0x2ae   : > { %v1084_v4 = vadd.f32 %v2052_v2, %v2876_v12  ;;  %v1078_v5 = vpop.f32.mrb[39].mxu0 }
 0x2af   : > { %v1079_v6 = vadd.f32 %v2876_v12, %v1078_v5  ;;  %2127 = vmatprep.mubr.f32.mxu0 %v1211_v1 }
 0x2b0   : > { %2128 = vmatmul.mubr.f32.gmra.mrb[68].mxu0 %v1212_v3  ;;  %v1214_v9 = vmax.f32 %v1084_v4, 0.0 }
 0x2b1   : > { %v1213_v7 = vmax.f32 %v1079_v6, 0.0  ;;  %v2055_v8 = vpop.f32.mrb[40].mxu0 }
 0x2b2   : > { %v1094_v10 = vadd.f32 %v2055_v8, %v2876_v12  ;;  %v1088_v11 = vpop.f32.mrb[41].mxu0 }
 0x2b3   : > { %v1089_v13 = vadd.f32 %v2876_v12, %v1088_v11  ;;  %2130 = vmatprep.mubr.f32.mxu1 %v1213_v7 }
 0x2b4   : > { %2131 = vmatmul.mubr.f32.vlgmr.msra.gmra.mrb[32].mxu1 %v1214_v9  ;;  %v1216_v16 = vmax.f32 %v1094_v10, 0.0 }
 0x2b5   : > { %v1215_v14 = vmax.f32 %v1089_v13, 0.0  ;;  %v2058_v15 = vpop.f32.mrb[42].mxu0 }
 0x2b6   : > { %v1104_v17 = vadd.f32 %v2058_v15, %v2876_v12  ;;  %v1098_v18 = vpop.f32.mrb[43].mxu0 }
 0x2b7   : > { %v1099_v19 = vadd.f32 %v2876_v12, %v1098_v18  ;;  %2133 = vmatprep.mubr.f32.mxu1 %v1215_v14 }
 0x2b8   : > { %2134 = vmatmul.mubr.f32.gmra.mrb[34].mxu1 %v1216_v16  ;;  %v1218_v23 = vmax.f32 %v1104_v17, 0.0 }
 0x2b9   : > { %v1217_v20 = vmax.f32 %v1099_v19, 0.0  ;;  %v2061_v21 = vpop.f32.mrb[44].mxu0  ;;  %v2913_v19 = vld [vmem:[%s3042_s6] ss:$0 sm:$0xff] }
 0x2ba   : > { %v1114_v24 = vadd.f32 %v2061_v21, %v2876_v12  ;;  %v1108_v25 = vpop.f32.mrb[45].mxu0 }
 0x2bb   : > { %v1109_v26 = vadd.f32 %v2876_v12, %v1108_v25  ;;  %2136 = vmatprep.mubr.f32.mxu1 %v1217_v20 }
 0x2bc   : > { %2137 = vmatmul.mubr.f32.gmra.mrb[36].mxu1 %v1218_v23  ;;  %v1220_v29 = vmax.f32 %v1114_v24, 0.0 }
 0x2bd   : > { %v1219_v27 = vmax.f32 %v1109_v26, 0.0  ;;  %v2064_v28 = vpop.f32.mrb[46].mxu0 }
 0x2be   : > { %v1124_v30 = vadd.f32 %v2064_v28, %v2876_v12  ;;  %v1118_v31 = vpop.f32.mrb[47].mxu0 }
 0x2bf   : > { %v1119_v32 = vadd.f32 %v2876_v12, %v1118_v31  ;;  %2139 = vmatprep.mubr.f32.mxu1 %v1219_v27 }
 0x2c0   : > { %2140 = vmatmul.mubr.f32.gmra.mrb[38].mxu1 %v1220_v29  ;;  %v1222_v35 = vmax.f32 %v1124_v30, 0.0 }
 0x2c1   : > { %v1221_v33 = vmax.f32 %v1119_v32, 0.0  ;;  %v2067_v34 = vpop.f32.mrb[48].mxu0 }
 0x2c2   : > { %v1134_v36 = vadd.f32 %v2067_v34, %v2876_v12  ;;  %v1128_v37 = vpop.f32.mrb[49].mxu0 }
 0x2c3   : > { %v1129_v38 = vadd.f32 %v2876_v12, %v1128_v37  ;;  %2142 = vmatprep.mubr.f32.mxu1 %v1221_v33 }
 0x2c4   : > { %2143 = vmatmul.mubr.f32.gmra.mrb[40].mxu1 %v1222_v35  ;;  %v1224_v41 = vmax.f32 %v1134_v36, 0.0 }
 0x2c5   : > { %v1223_v39 = vmax.f32 %v1129_v38, 0.0  ;;  %v2070_v40 = vpop.f32.mrb[50].mxu0 }
 0x2c6   : > { %v1144_v42 = vadd.f32 %v2070_v40, %v2876_v12  ;;  %v1138_v43 = vpop.f32.mrb[51].mxu0 }
 0x2c7   : > { %v1139_v44 = vadd.f32 %v2876_v12, %v1138_v43  ;;  %2145 = vmatprep.mubr.f32.mxu1 %v1223_v39 }
 0x2c8   : > { %2146 = vmatmul.mubr.f32.gmra.mrb[42].mxu1 %v1224_v41  ;;  %v1226_v47 = vmax.f32 %v1144_v42, 0.0 }
 0x2c9   : > { %v1225_v45 = vmax.f32 %v1139_v44, 0.0  ;;  %v2073_v46 = vpop.f32.mrb[52].mxu0 }
 0x2ca   : > { %v1154_v48 = vadd.f32 %v2073_v46, %v2876_v12  ;;  %v1148_v49 = vpop.f32.mrb[53].mxu0 }
 0x2cb   : > { %v1149_v50 = vadd.f32 %v2876_v12, %v1148_v49  ;;  %2148 = vmatprep.mubr.f32.mxu1 %v1225_v45 }
 0x2cc   : > { %2149 = vmatmul.mubr.f32.gmra.mrb[44].mxu1 %v1226_v47  ;;  %v1228_v53 = vmax.f32 %v1154_v48, 0.0 }
 0x2cd   : > { %v1227_v51 = vmax.f32 %v1149_v50, 0.0  ;;  %v2076_v52 = vpop.f32.mrb[54].mxu0 }
 0x2ce   : > { %v1164_v54 = vadd.f32 %v2076_v52, %v2876_v12  ;;  %v1158_v55 = vpop.f32.mrb[55].mxu0 }
 0x2cf   : > { %v1159_v56 = vadd.f32 %v2876_v12, %v1158_v55  ;;  %2151 = vmatprep.mubr.f32.mxu1 %v1227_v51 }
 0x2d0   : > { %2152 = vmatmul.mubr.f32.gmra.mrb[46].mxu1 %v1228_v53  ;;  %v1230_v59 = vmax.f32 %v1164_v54, 0.0 }
 0x2d1   : > { %v1229_v57 = vmax.f32 %v1159_v56, 0.0  ;;  %v2079_v58 = vpop.f32.mrb[56].mxu0 }
 0x2d2   : > { %v1174_v22 = vadd.f32 %v2079_v58, %v2876_v12  ;;  %v1168_v60 = vpop.f32.mrb[57].mxu0 }
 0x2d3   : > { %v1169_v61 = vadd.f32 %v2876_v12, %v1168_v60  ;;  %2154 = vmatprep.mubr.f32.mxu1 %v1229_v57 }
 0x2d4   : > { %2155 = vmatmul.mubr.f32.gmra.mrb[48].mxu1 %v1230_v59  ;;  %v1232_v0 = vmax.f32 %v1174_v22, 0.0 }
 0x2d5   : > { %v1231_v62 = vmax.f32 %v1169_v61, 0.0  ;;  %v2082_v63 = vpop.f32.mrb[58].mxu0 }
 0x2d6   : > { %v1184_v1 = vadd.f32 %v2082_v63, %v2876_v12  ;;  %v1178_v2 = vpop.f32.mrb[59].mxu0 }
 0x2d7   : > { %v1179_v3 = vadd.f32 %v2876_v12, %v1178_v2  ;;  %2157 = vmatprep.mubr.f32.mxu1 %v1231_v62 }
 0x2d8   : > { %2158 = vmatmul.mubr.f32.gmra.mrb[50].mxu1 %v1232_v0  ;;  %v1234_v6 = vmax.f32 %v1184_v1, 0.0 }
 0x2d9   : > { %v1233_v4 = vmax.f32 %v1179_v3, 0.0  ;;  %v2085_v5 = vpop.f32.mrb[60].mxu0 }
 0x2da   : > { %v1194_v7 = vadd.f32 %v2085_v5, %v2876_v12  ;;  %v1188_v8 = vpop.f32.mrb[61].mxu0 }
 0x2db   : > { %v1189_v9 = vadd.f32 %v2876_v12, %v1188_v8  ;;  %2160 = vmatprep.mubr.f32.mxu1 %v1233_v4 }
 0x2dc   : > { %2161 = vmatmul.mubr.f32.gmra.mrb[52].mxu1 %v1234_v6  ;;  %v1236_v13 = vmax.f32 %v1194_v7, 0.0 }
 0x2dd   : > { %v1235_v10 = vmax.f32 %v1189_v9, 0.0  ;;  %v2088_v11 = vpop.f32.mrb[62].mxu0 }
 0x2de   : > { %v1204_v14 = vadd.f32 %v2088_v11, %v2876_v12  ;;  %v1198_v15 = vpop.f32.mrb[63].mxu0 }
 0x2df   : > { %v1199_v16 = vadd.f32 %v2876_v12, %v1198_v15  ;;  %2163 = vmatprep.mubr.f32.mxu1 %v1235_v10 }
 0x2e0   : > { %2164 = vmatmul.mubr.f32.gmra.mrb[54].mxu1 %v1236_v13  ;;  %v1238_v18 = vmax.f32 %v1204_v14, 0.0 }
 0x2e1   : > { %v1237_v17 = vmax.f32 %v1199_v16, 0.0 }
 0x2e3   : > { %2166 = vmatprep.mubr.f32.mxu1 %v1237_v17 }
 0x2e4   : > { %2167 = vmatmul.mubr.f32.gmra.mrb[56].mxu1 %v1238_v18 }
 0x37b   : > { %v2123_v20 = vpop.f32.mrb[64].mxu0 }
 0x37c   : > { %v1334_v21 = vadd.f32 %v2123_v20, %v2913_v19  ;;  %v1328_v23 = vpop.f32.mrb[65].mxu0 }
 0x37d   : > { %v1329_v24 = vadd.f32 %v2913_v19, %v1328_v23 }
 0x37e   : > { %2330 = vtanh.f32 %v1334_v21 }
 0x37f   : > { %2332 = vtanh.f32 %v1329_v24  ;;  %v2126_v12 = vpop.f32.mrb[66].mxu0 }
 0x380   : > { %v1344_v25 = vadd.f32 %v2126_v12, %v2913_v19  ;;  %v1338_v26 = vpop.f32.mrb[67].mxu0 }
 0x381   : > { %v1339_v27 = vadd.f32 %v2913_v19, %v1338_v26 }
 0x382   : > { %2334 = vtanh.f32 %v1344_v25 }
 0x383   : > { %2336 = vtanh.f32 %v1339_v27  ;;  %v2129_v28 = vpop.f32.mrb[68].mxu0 }
 0x384   : > { %v1354_v29 = vadd.f32 %v2129_v28, %v2913_v19  ;;  %v1348_v30 = vpop.f32.mrb[69].mxu0 }
 0x385   : > { %v1349_v31 = vadd.f32 %v2913_v19, %v1348_v30 }
 0x386   : > { %2338 = vtanh.f32 %v1354_v29 }
 0x387   : > { %2340 = vtanh.f32 %v1349_v31  ;;  %v2132_v32 = vpop.f32.mrb[32].mxu1 }
 0x388   : > { %v2331_v33 = vpop.eup %2330  ;;  %v1364_v34 = vadd.f32 %v2132_v32, %v2913_v19  ;;  %v1358_v35 = vpop.f32.mrb[33].mxu1 }
 0x389   : > { %v2333_v36 = vpop.eup %2332  ;;  %1520 = vst [vmem:[%s2925_s29 + $0x8] sm:$0xff] %v2331_v33  ;;  %v1359_v37 = vadd.f32 %v2913_v19, %v1358_v35 }
 0x38a   : > { %1519 = vst [vmem:[%s2925_s29] sm:$0xff] %v2333_v36  ;;  %2342 = vtanh.f32 %v1364_v34 }
 0x38b   : > { %2344 = vtanh.f32 %v1359_v37  ;;  %v2135_v38 = vpop.f32.mrb[34].mxu1 }
 0x38c   : > { %v2335_v39 = vpop.eup %2334  ;;  %v1374_v40 = vadd.f32 %v2135_v38, %v2913_v19  ;;  %v1368_v41 = vpop.f32.mrb[35].mxu1 }
 0x38d   : > { %v2337_v42 = vpop.eup %2336  ;;  %1522 = vst [vmem:[%s2925_s29 + $0x18] sm:$0xff] %v2335_v39  ;;  %v1369_v43 = vadd.f32 %v2913_v19, %v1368_v41 }
 0x38e   : > { %1521 = vst [vmem:[%s2925_s29 + $0x10] sm:$0xff] %v2337_v42  ;;  %2346 = vtanh.f32 %v1374_v40 }
 0x38f   : > { %2348 = vtanh.f32 %v1369_v43  ;;  %v2138_v44 = vpop.f32.mrb[36].mxu1 }
 0x390   : > { %v2339_v45 = vpop.eup %2338  ;;  %v1384_v46 = vadd.f32 %v2138_v44, %v2913_v19  ;;  %v1378_v47 = vpop.f32.mrb[37].mxu1 }
 0x391   : > { %v2341_v48 = vpop.eup %2340  ;;  %1524 = vst [vmem:[%s2925_s29 + $0x28] sm:$0xff] %v2339_v45  ;;  %v1379_v49 = vadd.f32 %v2913_v19, %v1378_v47 }
 0x392   : > { %1523 = vst [vmem:[%s2925_s29 + $0x20] sm:$0xff] %v2341_v48  ;;  %2350 = vtanh.f32 %v1384_v46 }
 0x393   : > { %2352 = vtanh.f32 %v1379_v49  ;;  %v2141_v50 = vpop.f32.mrb[38].mxu1 }
 0x394   : > { %v2343_v51 = vpop.eup %2342  ;;  %v1394_v52 = vadd.f32 %v2141_v50, %v2913_v19  ;;  %v1388_v53 = vpop.f32.mrb[39].mxu1 }
 0x395   : > { %v2345_v54 = vpop.eup %2344  ;;  %1526 = vst [vmem:[%s2925_s29 + $0x38] sm:$0xff] %v2343_v51  ;;  %v1389_v55 = vadd.f32 %v2913_v19, %v1388_v53 }
 0x396   : > { %1525 = vst [vmem:[%s2925_s29 + $0x30] sm:$0xff] %v2345_v54  ;;  %2354 = vtanh.f32 %v1394_v52 }
 0x397   : > { %2356 = vtanh.f32 %v1389_v55  ;;  %v2144_v56 = vpop.f32.mrb[40].mxu1 }
 0x398   : > { %v2347_v57 = vpop.eup %2346  ;;  %v1404_v58 = vadd.f32 %v2144_v56, %v2913_v19  ;;  %v1398_v59 = vpop.f32.mrb[41].mxu1 }
 0x399   : > { %v2349_v22 = vpop.eup %2348  ;;  %1528 = vst [vmem:[%s2925_s29 + $0x48] sm:$0xff] %v2347_v57  ;;  %v1399_v60 = vadd.f32 %v2913_v19, %v1398_v59 }
 0x39a   : > { %1527 = vst [vmem:[%s2925_s29 + $0x40] sm:$0xff] %v2349_v22  ;;  %2358 = vtanh.f32 %v1404_v58 }
 0x39b   : > { %2360 = vtanh.f32 %v1399_v60  ;;  %v2147_v61 = vpop.f32.mrb[42].mxu1 }
 0x39c   : > { %v2351_v62 = vpop.eup %2350  ;;  %v1414_v63 = vadd.f32 %v2147_v61, %v2913_v19  ;;  %v1408_v0 = vpop.f32.mrb[43].mxu1 }
 0x39d   : > { %v2353_v1 = vpop.eup %2352  ;;  %1530 = vst [vmem:[%s2925_s29 + $0x58] sm:$0xff] %v2351_v62  ;;  %v1409_v2 = vadd.f32 %v2913_v19, %v1408_v0 }
 0x39e   : > { %1529 = vst [vmem:[%s2925_s29 + $0x50] sm:$0xff] %v2353_v1  ;;  %2362 = vtanh.f32 %v1414_v63 }
 0x39f   : > { %2364 = vtanh.f32 %v1409_v2  ;;  %v2150_v3 = vpop.f32.mrb[44].mxu1 }
 0x3a0   : > { %v2355_v4 = vpop.eup %2354  ;;  %v1424_v5 = vadd.f32 %v2150_v3, %v2913_v19  ;;  %v1418_v6 = vpop.f32.mrb[45].mxu1 }
 0x3a1   : > { %v2357_v7 = vpop.eup %2356  ;;  %1532 = vst [vmem:[%s2925_s29 + $0x68] sm:$0xff] %v2355_v4  ;;  %v1419_v8 = vadd.f32 %v2913_v19, %v1418_v6 }
 0x3a2   : > { %1531 = vst [vmem:[%s2925_s29 + $0x60] sm:$0xff] %v2357_v7  ;;  %2366 = vtanh.f32 %v1424_v5 }
 0x3a3   : > { %2368 = vtanh.f32 %v1419_v8  ;;  %v2153_v9 = vpop.f32.mrb[46].mxu1 }
 0x3a4   : > { %v2359_v10 = vpop.eup %2358  ;;  %v1434_v11 = vadd.f32 %v2153_v9, %v2913_v19  ;;  %v1428_v13 = vpop.f32.mrb[47].mxu1 }
 0x3a5   : > { %v2361_v14 = vpop.eup %2360  ;;  %1534 = vst [vmem:[%s2925_s29 + $0x78] sm:$0xff] %v2359_v10  ;;  %v1429_v15 = vadd.f32 %v2913_v19, %v1428_v13 }
 0x3a6   : > { %1533 = vst [vmem:[%s2925_s29 + $0x70] sm:$0xff] %v2361_v14  ;;  %2370 = vtanh.f32 %v1434_v11 }
 0x3a7   : > { %2372 = vtanh.f32 %v1429_v15  ;;  %v2156_v16 = vpop.f32.mrb[48].mxu1 }
 0x3a8   : > { %v2363_v17 = vpop.eup %2362  ;;  %v1444_v18 = vadd.f32 %v2156_v16, %v2913_v19  ;;  %v1438_v20 = vpop.f32.mrb[49].mxu1 }
 0x3a9   : > { %v2365_v21 = vpop.eup %2364  ;;  %1536 = vst [vmem:[%s2925_s29 + $0x88] sm:$0xff] %v2363_v17  ;;  %v1439_v23 = vadd.f32 %v2913_v19, %v1438_v20 }
 0x3aa   : > { %1535 = vst [vmem:[%s2925_s29 + $0x80] sm:$0xff] %v2365_v21  ;;  %2374 = vtanh.f32 %v1444_v18 }
 0x3ab   : > { %2376 = vtanh.f32 %v1439_v23  ;;  %v2159_v24 = vpop.f32.mrb[50].mxu1 }
 0x3ac   : > { %v2367_v12 = vpop.eup %2366  ;;  %v1454_v25 = vadd.f32 %v2159_v24, %v2913_v19  ;;  %v1448_v26 = vpop.f32.mrb[51].mxu1 }
 0x3ad   : > { %v2369_v27 = vpop.eup %2368  ;;  %1538 = vst [vmem:[%s2925_s29 + $0x98] sm:$0xff] %v2367_v12  ;;  %v1449_v28 = vadd.f32 %v2913_v19, %v1448_v26 }
 0x3ae   : > { %1537 = vst [vmem:[%s2925_s29 + $0x90] sm:$0xff] %v2369_v27  ;;  %2378 = vtanh.f32 %v1454_v25 }
 0x3af   : > { %2380 = vtanh.f32 %v1449_v28  ;;  %v2162_v29 = vpop.f32.mrb[52].mxu1 }
 0x3b0   : > { %v2371_v30 = vpop.eup %2370  ;;  %v1464_v31 = vadd.f32 %v2162_v29, %v2913_v19  ;;  %v1458_v32 = vpop.f32.mrb[53].mxu1 }
 0x3b1   : > { %v2373_v33 = vpop.eup %2372  ;;  %1540 = vst [vmem:[%s2925_s29 + $0xa8] sm:$0xff] %v2371_v30  ;;  %v1459_v34 = vadd.f32 %v2913_v19, %v1458_v32 }
 0x3b2   : > { %1539 = vst [vmem:[%s2925_s29 + $0xa0] sm:$0xff] %v2373_v33  ;;  %2382 = vtanh.f32 %v1464_v31 }
 0x3b3   : > { %2384 = vtanh.f32 %v1459_v34  ;;  %v2165_v35 = vpop.f32.mrb[54].mxu1 }
 0x3b4   : > { %v2375_v36 = vpop.eup %2374  ;;  %v1474_v37 = vadd.f32 %v2165_v35, %v2913_v19  ;;  %v1468_v38 = vpop.f32.mrb[55].mxu1 }
 0x3b5   : > { %v2377_v39 = vpop.eup %2376  ;;  %1542 = vst [vmem:[%s2925_s29 + $0xb8] sm:$0xff] %v2375_v36  ;;  %v1469_v40 = vadd.f32 %v2913_v19, %v1468_v38 }
 0x3b6   : > { %1541 = vst [vmem:[%s2925_s29 + $0xb0] sm:$0xff] %v2377_v39  ;;  %2386 = vtanh.f32 %v1474_v37 }
 0x3b7   : > { %2388 = vtanh.f32 %v1469_v40  ;;  %v2168_v41 = vpop.f32.mrb[56].mxu1 }
 0x3b8   : > { %v2379_v42 = vpop.eup %2378  ;;  %v1484_v43 = vadd.f32 %v2168_v41, %v2913_v19  ;;  %v1478_v44 = vpop.f32.mrb[57].mxu1 }
 0x3b9   : > { %v2381_v45 = vpop.eup %2380  ;;  %1544 = vst [vmem:[%s2925_s29 + $0xc8] sm:$0xff] %v2379_v42  ;;  %v1479_v46 = vadd.f32 %v2913_v19, %v1478_v44 }
 0x3ba   : > { %1543 = vst [vmem:[%s2925_s29 + $0xc0] sm:$0xff] %v2381_v45  ;;  %2390 = vtanh.f32 %v1484_v43 }
 0x3bb   : > { %2392 = vtanh.f32 %v1479_v46 }
 0x3bc   : > { %v2383_v47 = vpop.eup %2382 }
 0x3bd   : > { %v2385_v48 = vpop.eup %2384  ;;  %1546 = vst [vmem:[%s2925_s29 + $0xd8] sm:$0xff] %v2383_v47 }
 0x3be   : > { %1545 = vst [vmem:[%s2925_s29 + $0xd0] sm:$0xff] %v2385_v48 }
 0x3c0   : > { %v2387_v49 = vpop.eup %2386 }
 0x3c1   : > { %v2389_v50 = vpop.eup %2388  ;;  %1548 = vst [vmem:[%s2925_s29 + $0xe8] sm:$0xff] %v2387_v49 }
 0x3c2   : > { %1547 = vst [vmem:[%s2925_s29 + $0xe0] sm:$0xff] %v2389_v50 }
 0x3c4   : > { %v2391_v19 = vpop.eup %2390 }
 0x3c5   : > { %v2393_v51 = vpop.eup %2392  ;;  %1550 = vst [vmem:[%s2925_s29 + $0xf8] sm:$0xff] %v2391_v19 }
 0x3c6   : > { %1549 = vst [vmem:[%s2925_s29 + $0xf0] sm:$0xff] %v2393_v51 }
 0x3c7   : > { %2407 = shalt.err (!%p2404_p3)
}
 0x3c8   : > { %s2408_s17 = scalar_lea.hbm %s2987_s19, 4096  ;;  %s2412_s21 = scalar_lea.hbm %s3043_s7, 32768 }
 0x3c9   : > { %p2409_p4 = scmp.ne.s32.totalorder %s2987_s19, %s2408_s17  ;;  %p2413_p9 = scmp.lt.u32.totalorder %s2987_s19, %s3043_s7 }
 0x3ca   : > { %p2414_p10 = scmp.lt.u32.totalorder %s2412_s21, %s2408_s17  ;;  %p2416_p12 = scmp.lt.u32.totalorder %s2408_s17, %s2987_s19 }
 0x3cb   : > { %p2410_p7 = pnand %p2409_p4, %p2539_p5 }
 0x3cc   : > { %p2415_p11 = por %p2414_p10, %p2413_p9 }
 0x3cd   : > { %p2411_p8 = pneg %p2410_p7 }
 0x3ce   : > { %p2417_p13 = por %p2416_p12, %p2415_p11 }
 0x3d0   : > { %p2418_p0 = pnand %p2417_p13, %p2411_p8 }
 0x3d2   : > { %2421 = shalt.err (!%p2418_p0)
}
 0x3d3   : > { %s2459_s8 = smov 128   ;;  %s2460_s9 = smov 8  }
 0x3d4   : > { %2289 = dma.vmem_to_hbm [thread:$0]  (%p2539_p5), %s2989_s23, 4096, %s2987_s19, %s2995_s28, %s2459_s8, %s2459_s8, %s2460_s9  }
 0x3d5 PF: > { %p2295_p1 = scmp.ge.s32.totalorder %s2456_s27, 2  ;;  %s1580_s13 = sand.u32 1, %s2444_s24  }
 0x3d6   : > { %s1581_s14 = scalar_lea.sflag [#allocation3], %s1580_s13 }
 0x3d7   : > { %p2292_p2 = pnand %p2295_p1, %p2543_p6 }
 0x3d9   : > { %2439 = dma.done.wait (!%p2292_p2), %s1581_s14, 4096  }
 0x3da   : > { %2441 = vsyncadd (!%p2292_p2), %s1581_s14, 4294963200  ;;  %p17_p3 = scmp.ge.s32.totalorder %s2526_s30, 10   ;;  %s3046_s24 = smov %s2448_s25 }
 0x3db   : > { %s3047_s25 = smov %s2452_s26  ;;  %s3048_s26 = smov %s2537_s10 }
 0x3dc   : > { %s3049_s27 = smov %s2526_s30  ;;  %19 = sbr.rel (!%p17_p3) target bundleno = 3 (0x3), region = 85 }
 0x3e3   :  { %1586 = vsyncpa [#allocation3], 1 }
 0x3e4   :  { %1588 = vsyncpa [#allocation3 + $0x1], 1 }

// kernel: tpu_custom_call.1
= control target key start
LH: loop header
LB: loop body
LE: loop exit
PB: predicated region body
PF: predicated region fallthrough
CT: control target
= control target key end

     0   :  { %12 = vsyncpa [#allocation3], 0  ;;  %s3036_s0 = inlined_call_operand.vmem [shape: f32[2048,32], index: 0, kind: input, shape index: {}]   ;;  %s3037_s1 = inlined_call_operand.vmem [shape: f32[32,128], index: 1, kind: input, shape index: {}]   ;;  %s3038_s2 = inlined_call_operand.vmem [shape: f32[1,128], index: 2, kind: input, shape index: {}]   ;;  %s3039_s3 = inlined_call_operand.vmem [shape: f32[2,128,128], index: 3, kind: input, shape index: {}]   ;;  %s3040_s4 = inlined_call_operand.vmem [shape: f32[2,1,128], index: 4, kind: input, shape index: {}]   ;;  %s3041_s5 = inlined_call_operand.vmem [shape: f32[128,128], index: 5, kind: input, shape index: {}]   ;;  %s3042_s6 = inlined_call_operand.vmem [shape: f32[1,128], index: 6, kind: input, shape index: {}]   ;;  %s3043_s7 = inlined_call_operand.hbm [shape: f32[2048,128], index: 7, kind: output, shape index: {}]  }
   0x1   :  { %14 = vsyncpa [#allocation3 + $0x1], 0  ;;  %s2501_s24 = smov 0   ;;  %s2503_s25 = smov 0  }
   0x2   :  { %s2505_s26 = smov 0   ;;  %s2507_s27 = smov 0  }
   0x3 LB: > { %s2522_s28 = sadd.s32 4294967295, %s2456_s27   ;;  %s1627_s29 = sadd.s32 4294967294, %s2456_s27   ;;  %s2456_s27 = sphi %s2507_s27, %s3049_s27   ;;  %s2452_s26 = sphi %s2505_s26, %s3048_s26   ;;  %s2448_s25 = sphi %s2503_s25, %s3047_s25   ;;  %s2444_s24 = sphi %s2501_s24, %s3046_s24  }
   0x4   : > { %s2526_s30 = sadd.s32 1, %s2456_s27   ;;  %s179_s8 = sadd.s32 1, %s2452_s26 }
   0x5   : > { %s176_s9 = ssub.s32 %s2456_s27, %s2526_s30  ;;  %p189_p0 = scmp.ne.s32.totalorder %s2452_s26, %s2448_s25 }
   0x6   : > { %p177_p1 = scmp.eq.s32.totalorder %s176_s9, 0  ;;  %p190_p2 = scmp.eq.s32.totalorder %s2522_s28, 7 }
   0x7   : > { %p195_p3 = scmp.ne.s32.totalorder %s2448_s25, %s2444_s24  ;;  %p196_p4 = scmp.eq.s32.totalorder %s1627_s29, 7 }
   0x8   : > { %s2537_s10 = scalar_select %p177_p1, %s2452_s26, %s179_s8  }
   0x9   : > { %p2539_p5 = por %p190_p2, %p189_p0  ;;  %p2543_p6 = por %p196_p4, %p195_p3 }
   0xa   : > { %p1630_p7 = scmp.ge.s32.totalorder %s2456_s27, 1  ;;  %p241_p8 = scmp.lt.s32.totalorder %s2456_s27, 9 }
   0xc   : > { %p242_p9 = pnand %p1630_p7, %p241_p8 }
   0xd   : > { %v312_v0 = vld [vmem:[%s3037_s1] sm:$0xff] (!%p242_p9)  ;;  %v313_v1 = vld [vmem:[%s3037_s1 + $0x8] sm:$0xff] (!%p242_p9)  ;;  %v314_v2 = vld [vmem:[%s3037_s1 + $0x10] sm:$0xff] (!%p242_p9)  ;;  %s1632_s19 = sshll.u32 (!%p242_p9), %s2522_s28, 5  ;;  %vm323_vm0 = vcmask (!%p242_p9), 261120   ;;  %s270_s20 = sand.u32 (!%p242_p9), 1, %s2448_s25  }
   0xe   : > { %245 = sbr.rel (%p242_p9) target bundleno = 981 (0x3d5), region = 48  ;;  %v2169_v3 = vpack.c.bf16 (!%p242_p9), %v313_v1, %v312_v0  ;;  %v315_v4 = vld [vmem:[%s3037_s1 + $0x18] sm:$0xff] (!%p242_p9)  ;;  %p274_p10 = scmp.lt.s32.totalorder (!%p242_p9), %s1632_s19, 255  ;;  %v677_v5 = vld [vmem:[%s3039_s3] sm:$0xff] (!%p242_p9)  ;;  %v678_v6 = vld [vmem:[%s3039_s3 + $0x8] sm:$0xff] (!%p242_p9) }
   0xf   : > { %v2173_v7 = vpack.c.bf16 (!%p242_p9), %v315_v4, %v314_v2  ;;  %v2177_v8 = vpack.c.bf16 (!%p242_p9), %v678_v6, %v677_v5  ;;  %v679_v9 = vld [vmem:[%s3039_s3 + $0x10] sm:$0xff] (!%p242_p9)  ;;  %v680_v10 = vld [vmem:[%s3039_s3 + $0x18] sm:$0xff] (!%p242_p9)  ;;  %v681_v12 = vld [vmem:[%s3039_s3 + $0x20] sm:$0xff] (!%p242_p9)  ;;  %s1692_s22 = sshll.u32 (!%p242_p9), %s2522_s28, 12  ;;  %s2995_s28 = scalar_lea.sflag (!%p242_p9), [#allocation3], %s270_s20 }
  0x10   : > { %2170 = vmatprep.subr.bf16.mxu0 (!%p242_p9), %v2169_v3  ;;  %v2181_v11 = vpack.c.bf16 (!%p242_p9), %v680_v10, %v679_v9  ;;  %v682_v13 = vld [vmem:[%s3039_s3 + $0x28] sm:$0xff] (!%p242_p9)  ;;  %v683_v16 = vld [vmem:[%s3039_s3 + $0x30] sm:$0xff] (!%p242_p9)  ;;  %v684_v17 = vld [vmem:[%s3039_s3 + $0x38] sm:$0xff] (!%p242_p9)  ;;  %s2458_s14 = smov (!%p242_p9), [#allocation2]  }
  0x11   : > { %2172 = vmatpush3.bf16.msra.mxu0 (!%p242_p9), %v2169_v3  ;;  %2178 = vmatprep.subr.bf16.mxu1 (!%p242_p9), %v2177_v8  ;;  %v2185_v14 = vpack.c.bf16 (!%p242_p9), %v682_v13, %v681_v12  ;;  %v2189_v20 = vpack.c.bf16 (!%p242_p9), %v684_v17, %v683_v16  ;;  %v685_v21 = vld [vmem:[%s3039_s3 + $0x40] sm:$0xff] (!%p242_p9)  ;;  %v686_v22 = vld [vmem:[%s3039_s3 + $0x48] sm:$0xff] (!%p242_p9)  ;;  %v687_v26 = vld [vmem:[%s3039_s3 + $0x50] sm:$0xff] (!%p242_p9)  ;;  %s2398_s15 = sshll.u32 (!%p242_p9), %s2458_s14, 4  ;;  %s2399_s15 = int_to_ptr.vmem [resolvable:$false] %s2398_s15 }
  0x12   : > { %2174 = vmatprep.subr.bf16.mxu0 (!%p242_p9), %v2173_v7  ;;  %2180 = vmatpush3.bf16.msra.mxu1 (!%p242_p9), %v2177_v8  ;;  %v2193_v25 = vpack.c.bf16 (!%p242_p9), %v686_v22, %v685_v21  ;;  %v688_v27 = vld [vmem:[%s3039_s3 + $0x58] sm:$0xff] (!%p242_p9)  ;;  %v689_v31 = vld [vmem:[%s3039_s3 + $0x60] sm:$0xff] (!%p242_p9)  ;;  %v690_v32 = vld [vmem:[%s3039_s3 + $0x68] sm:$0xff] (!%p242_p9)  ;;  %s2400_s16 = scalar_lea.vmem (!%p242_p9), %s2399_s15, 8192 }
  0x13   : > { %2182 = vmatprep.subr.bf16.mxu1 (!%p242_p9), %v2181_v11  ;;  %v2197_v30 = vpack.c.bf16 (!%p242_p9), %v688_v27, %v687_v26  ;;  %v2201_v35 = vpack.c.bf16 (!%p242_p9), %v690_v32, %v689_v31  ;;  %v691_v59 = vld [vmem:[%s3039_s3 + $0x70] sm:$0xff] (!%p242_p9)  ;;  %v692_v60 = vld [vmem:[%s3039_s3 + $0x78] sm:$0xff] (!%p242_p9)  ;;  %v1668_v62 = vld [vmem:[%s3039_s3 + $0x80] sm:$0xff] (!%p242_p9) }
  0x14   : > { %v2205_v61 = vpack.c.bf16 (!%p242_p9), %v692_v60, %v691_v59  ;;  %v1669_v63 = vld [vmem:[%s3039_s3 + $0x88] sm:$0xff] (!%p242_p9)  ;;  %v1670_v0 = vld [vmem:[%s3039_s3 + $0x90] sm:$0xff] (!%p242_p9)  ;;  %v1671_v2 = vld [vmem:[%s3039_s3 + $0x98] sm:$0xff] (!%p242_p9) }
  0x15   : > { %s3051_s19 = smov (!%p274_p10, %s1632_s19), 255  ;;  %2176 = vmatpush3.bf16.msra.mxu0 %v2173_v7  ;;  %v2209_v1 = vpack.c.bf16 %v1669_v63, %v1668_v62  ;;  %v2213_v3 = vpack.c.bf16 %v1671_v2, %v1670_v0  ;;  %v1672_v4 = vld [vmem:[%s3039_s3 + $0xa0] sm:$0xff]  ;;  %v1673_v5 = vld [vmem:[%s3039_s3 + $0xa8] sm:$0xff]  ;;  %v1674_v7 = vld [vmem:[%s3039_s3 + $0xb0] sm:$0xff] }
  0x16   : > { %s1633_s21 = sshll.u32 %s3051_s19, 3  ;;  %2184 = vmatpush3.bf16.msra.mxu1 %v2181_v11  ;;  %v2217_v6 = vpack.c.bf16 %v1673_v5, %v1672_v4  ;;  %v1675_v8 = vld [vmem:[%s3039_s3 + $0xb8] sm:$0xff]  ;;  %v1676_v10 = vld [vmem:[%s3039_s3 + $0xc0] sm:$0xff]  ;;  %v1677_v11 = vld [vmem:[%s3039_s3 + $0xc8] sm:$0xff]  ;;  %s2987_s19 = scalar_lea.hbm %s3043_s7, %s1692_s22 }
  0x17   : > { %s2583_s29 = scalar_lea.vmem %s3036_s0, %s1633_s21  ;;  %2186 = vmatprep.subr.bf16.mxu1 %v2185_v14  ;;  %2210 = vmatprep.subr.bf16.mxu0 %v2209_v1  ;;  %v2221_v9 = vpack.c.bf16 %v1675_v8, %v1674_v7  ;;  %v2225_v12 = vpack.c.bf16 %v1677_v11, %v1676_v10  ;;  %v1678_v13 = vld [vmem:[%s3039_s3 + $0xd0] sm:$0xff]  ;;  %v1680_v16 = vld [vmem:[%s3039_s3 + $0xe0] sm:$0xff]  ;;  %v1681_v17 = vld [vmem:[%s3039_s3 + $0xe8] sm:$0xff]  ;;  %s1631_s21 = sshll.u32 %s270_s20, 8 }
  0x18   : > { %v280_v15 = vld [vmem:[%s2583_s29] sm:$0xff]  ;;  %v281_v18 = vld [vmem:[%s2583_s29 + $0x8] sm:$0xff]  ;;  %v282_v19 = vld [vmem:[%s2583_s29 + $0x10] sm:$0xff] }
  0x19   : > { %1881 = vmatprep.mubr.msk.f32.mxu0 %vm323_vm0, %v280_v15  ;;  %v283_v23 = vld [vmem:[%s2583_s29 + $0x18] sm:$0xff]  ;;  %v284_v24 = vld [vmem:[%s2583_s29 + $0x20] sm:$0xff]  ;;  %v285_v28 = vld [vmem:[%s2583_s29 + $0x28] sm:$0xff] }
  0x1a   : > { %1882 = vmatmul.mubr.msk.f32.vlgmr.msra.gmra.mrb[0].mxu0 %vm323_vm0, %v281_v18  ;;  %2188 = vmatpush3.bf16.msra.mxu1 %v2185_v14  ;;  %v286_v29 = vld [vmem:[%s2583_s29 + $0x30] sm:$0xff]  ;;  %v287_v33 = vld [vmem:[%s2583_s29 + $0x38] sm:$0xff]  ;;  %v288_v34 = vld [vmem:[%s2583_s29 + $0x40] sm:$0xff]  ;;  %v2233_v18 = vpack.c.bf16 %v1681_v17, %v1680_v16 }
  0x1b   : > { %1884 = vmatprep.mubr.msk.f32.mxu0 %vm323_vm0, %v282_v19  ;;  %2190 = vmatprep.subr.bf16.mxu1 %v2189_v20  ;;  %v289_v36 = vld [vmem:[%s2583_s29 + $0x48] sm:$0xff]  ;;  %v290_v37 = vld [vmem:[%s2583_s29 + $0x50] sm:$0xff]  ;;  %v291_v38 = vld [vmem:[%s2583_s29 + $0x58] sm:$0xff] }
  0x1c   : > { %v292_v39 = vld [vmem:[%s2583_s29 + $0x60] sm:$0xff]  ;;  %v293_v40 = vld [vmem:[%s2583_s29 + $0x68] sm:$0xff]  ;;  %v294_v41 = vld [vmem:[%s2583_s29 + $0x70] sm:$0xff]  ;;  %2212 = vmatpush3.bf16.msra.mxu0 %v2209_v1 }
  0x1d   : > { %v295_v42 = vld [vmem:[%s2583_s29 + $0x78] sm:$0xff]  ;;  %v296_v43 = vld [vmem:[%s2583_s29 + $0x80] sm:$0xff]  ;;  %v297_v44 = vld [vmem:[%s2583_s29 + $0x88] sm:$0xff]  ;;  %2214 = vmatprep.subr.bf16.mxu0 %v2213_v3 }
  0x1e   : > { %1885 = vmatmul.mubr.msk.f32.gmra.mrb[2].mxu0 %vm323_vm0, %v283_v23  ;;  %2192 = vmatpush3.bf16.msra.mxu1 %v2189_v20  ;;  %v298_v45 = vld [vmem:[%s2583_s29 + $0x90] sm:$0xff]  ;;  %v299_v46 = vld [vmem:[%s2583_s29 + $0x98] sm:$0xff]  ;;  %v300_v47 = vld [vmem:[%s2583_s29 + $0xa0] sm:$0xff] }
  0x1f   : > { %1887 = vmatprep.mubr.msk.f32.mxu0 %vm323_vm0, %v284_v24  ;;  %2194 = vmatprep.subr.bf16.mxu1 %v2193_v25  ;;  %v301_v48 = vld [vmem:[%s2583_s29 + $0xa8] sm:$0xff]  ;;  %v302_v49 = vld [vmem:[%s2583_s29 + $0xb0] sm:$0xff]  ;;  %v303_v50 = vld [vmem:[%s2583_s29 + $0xb8] sm:$0xff] }
  0x20   : > { %v304_v51 = vld [vmem:[%s2583_s29 + $0xc0] sm:$0xff]  ;;  %v305_v52 = vld [vmem:[%s2583_s29 + $0xc8] sm:$0xff]  ;;  %v306_v53 = vld [vmem:[%s2583_s29 + $0xd0] sm:$0xff]  ;;  %2216 = vmatpush3.bf16.msra.mxu0 %v2213_v3 }
  0x21   : > { %v307_v54 = vld [vmem:[%s2583_s29 + $0xd8] sm:$0xff]  ;;  %v308_v55 = vld [vmem:[%s2583_s29 + $0xe0] sm:$0xff]  ;;  %v309_v56 = vld [vmem:[%s2583_s29 + $0xe8] sm:$0xff]  ;;  %2218 = vmatprep.subr.bf16.mxu0 %v2217_v6 }
  0x22   : > { %1888 = vmatmul.mubr.msk.f32.gmra.mrb[4].mxu0 %vm323_vm0, %v285_v28  ;;  %2196 = vmatpush3.bf16.msra.mxu1 %v2193_v25  ;;  %v310_v57 = vld [vmem:[%s2583_s29 + $0xf0] sm:$0xff]  ;;  %v311_v58 = vld [vmem:[%s2583_s29 + $0xf8] sm:$0xff]  ;;  %v2730_v22 = vld [vmem:[%s3038_s2] ss:$0 sm:$0xff]  ;;  %s2925_s29 = scalar_lea.vmem [#allocation2], %s1631_s21 }
  0x23   : > { %1890 = vmatprep.mubr.msk.f32.mxu0 %vm323_vm0, %v286_v29  ;;  %2198 = vmatprep.subr.bf16.mxu1 %v2197_v30  ;;  %v1679_v14 = vld [vmem:[%s3039_s3 + $0xd8] sm:$0xff]  ;;  %v1682_v19 = vld [vmem:[%s3039_s3 + $0xf0] sm:$0xff]  ;;  %s1565_s23 = sshll.u32 %s2925_s29, 4  ;;  %s2989_s23 = int_to_ptr.vmem [resolvable:$true] %s1565_s23 }
  0x24   : > { %2220 = vmatpush3.bf16.msra.mxu0 %v2217_v6  ;;  %v2229_v15 = vpack.c.bf16 %v1679_v14, %v1678_v13  ;;  %v1683_v20 = vld [vmem:[%s3039_s3 + $0xf8] sm:$0xff]  ;;  %s2394_s13 = scalar_lea.vmem %s2989_s23, 4096  ;;  %p2401_p0 = scmp.lt.s32.totalorder %s2989_s23, %s2399_s15 }
  0x25   : > { %2222 = vmatprep.subr.bf16.mxu0 %v2221_v9  ;;  %v2237_v21 = vpack.c.bf16 %v1683_v20, %v1682_v19  ;;  %p2395_p11 = scmp.ne.s32.totalorder %s2989_s23, %s2394_s13  ;;  %p2402_p1 = scmp.lt.s32.totalorder %s2400_s16, %s2394_s13 }
  0x26   : > { %1891 = vmatmul.mubr.msk.f32.gmra.mrb[6].mxu0 %vm323_vm0, %v287_v33  ;;  %2200 = vmatpush3.bf16.msra.mxu1 %v2197_v30 }
  0x27   : > { %1893 = vmatprep.mubr.msk.f32.mxu0 %vm323_vm0, %v288_v34  ;;  %2202 = vmatprep.subr.bf16.mxu1 %v2201_v35  ;;  %p2396_p12 = pnand %p2395_p11, %p2539_p5  ;;  %p2403_p2 = por %p2402_p1, %p2401_p0 }
  0x28   : > { %2224 = vmatpush3.bf16.msra.mxu0 %v2221_v9 }
  0x29   : > { %2226 = vmatprep.subr.bf16.mxu0 %v2225_v12  ;;  %p2397_p13 = pneg %p2396_p12 }
  0x2a   : > { %1894 = vmatmul.mubr.msk.f32.gmra.mrb[8].mxu0 %vm323_vm0, %v289_v36  ;;  %2204 = vmatpush3.bf16.msra.mxu1 %v2201_v35 }
  0x2b   : > { %1896 = vmatprep.mubr.msk.f32.mxu0 %vm323_vm0, %v290_v37  ;;  %2206 = vmatprep.subr.bf16.mxu1 %v2205_v61  ;;  %p2404_p3 = pnand %p2403_p2, %p2397_p13 }
  0x2c   : > { %2228 = vmatpush3.bf16.msra.mxu0 %v2225_v12 }
  0x2d   : > { %2230 = vmatprep.subr.bf16.mxu0 %v2229_v15 }
  0x2e   : > { %1897 = vmatmul.mubr.msk.f32.gmra.mrb[10].mxu0 %vm323_vm0, %v291_v38  ;;  %2208 = vmatpush3.bf16.msra.mxu1 %v2205_v61 }
  0x2f   : > { %1899 = vmatprep.mubr.msk.f32.mxu0 %vm323_vm0, %v292_v39 }
  0x30   : > { %2232 = vmatpush3.bf16.msra.mxu0 %v2229_v15 }
  0x31   : > { %2234 = vmatprep.subr.bf16.mxu0 %v2233_v18 }
  0x32   : > { %1900 = vmatmul.mubr.msk.f32.gmra.mrb[12].mxu0 %vm323_vm0, %v293_v40 }
  0x33   : > { %1902 = vmatprep.mubr.msk.f32.mxu0 %vm323_vm0, %v294_v41 }
  0x34   : > { %2236 = vmatpush3.bf16.msra.mxu0 %v2233_v18 }
  0x35   : > { %2238 = vmatprep.subr.bf16.mxu0 %v2237_v21 }
  0x36   : > { %1903 = vmatmul.mubr.msk.f32.gmra.mrb[14].mxu0 %vm323_vm0, %v295_v42 }
  0x37   : > { %1905 = vmatprep.mubr.msk.f32.mxu0 %vm323_vm0, %v296_v43 }
  0x38   : > { %2240 = vmatpush3.bf16.msra.mxu0 %v2237_v21 }
  0x3a   : > { %1906 = vmatmul.mubr.msk.f32.gmra.mrb[16].mxu0 %vm323_vm0, %v297_v44 }
  0x3b   : > { %1908 = vmatprep.mubr.msk.f32.mxu0 %vm323_vm0, %v298_v45 }
  0x3e   : > { %1909 = vmatmul.mubr.msk.f32.gmra.mrb[18].mxu0 %vm323_vm0, %v299_v46 }
  0x3f   : > { %1911 = vmatprep.mubr.msk.f32.mxu0 %vm323_vm0, %v300_v47 }
  0x42   : > { %1912 = vmatmul.mubr.msk.f32.gmra.mrb[20].mxu0 %vm323_vm0, %v301_v48 }
  0x43   : > { %1914 = vmatprep.mubr.msk.f32.mxu0 %vm323_vm0, %v302_v49 }
  0x46   : > { %1915 = vmatmul.mubr.msk.f32.gmra.mrb[22].mxu0 %vm323_vm0, %v303_v50 }
  0x47   : > { %1917 = vmatprep.mubr.msk.f32.mxu0 %vm323_vm0, %v304_v51 }
  0x4a   : > { %1918 = vmatmul.mubr.msk.f32.gmra.mrb[24].mxu0 %vm323_vm0, %v305_v52 }
  0x4b   : > { %1920 = vmatprep.mubr.msk.f32.mxu0 %vm323_vm0, %v306_v53 }
  0x4e   : > { %1921 = vmatmul.mubr.msk.f32.gmra.mrb[26].mxu0 %vm323_vm0, %v307_v54 }
  0x4f   : > { %1923 = vmatprep.mubr.msk.f32.mxu0 %vm323_vm0, %v308_v55 }
  0x52   : > { %1924 = vmatmul.mubr.msk.f32.gmra.mrb[28].mxu0 %vm323_vm0, %v309_v56 }
  0x53   : > { %1926 = vmatprep.mubr.msk.f32.mxu0 %vm323_vm0, %v310_v57 }
  0x56   : > { %1927 = vmatmul.mubr.msk.f32.gmra.mrb[30].mxu0 %vm323_vm0, %v311_v58 }
  0xed   : > { %v1883_v23 = vpop.f32.mrb[0].mxu0 }
  0xee   : > { %v492_v24 = vadd.f32 %v1883_v23, %v2730_v22  ;;  %v486_v25 = vpop.f32.mrb[1].mxu0 }
  0xef   : > { %v487_v26 = vadd.f32 %v2730_v22, %v486_v25 }
  0xf0   : > { %v646_v29 = vmax.f32 %v492_v24, 0.0 }
  0xf1   : > { %v1886_v27 = vpop.f32.mrb[2].mxu0  ;;  %v645_v28 = vmax.f32 %v487_v26, 0.0 }
  0xf2   : > { %v502_v30 = vadd.f32 %v1886_v27, %v2730_v22  ;;  %v496_v31 = vpop.f32.mrb[3].mxu0 }
  0xf3   : > { %v497_v32 = vadd.f32 %v2730_v22, %v496_v31  ;;  %1961 = vmatprep.mubr.f32.mxu1 %v645_v28 }
  0xf4   : > { %1962 = vmatmul.mubr.f32.vlgmr.msra.gmra.mrb[0].mxu1 %v646_v29  ;;  %v648_v35 = vmax.f32 %v502_v30, 0.0 }
  0xf5   : > { %v647_v33 = vmax.f32 %v497_v32, 0.0  ;;  %v1889_v34 = vpop.f32.mrb[4].mxu0 }
  0xf6   : > { %v512_v36 = vadd.f32 %v1889_v34, %v2730_v22  ;;  %v506_v37 = vpop.f32.mrb[5].mxu0 }
  0xf7   : > { %v507_v38 = vadd.f32 %v2730_v22, %v506_v37  ;;  %1964 = vmatprep.mubr.f32.mxu1 %v647_v33 }
  0xf8   : > { %1965 = vmatmul.mubr.f32.gmra.mrb[2].mxu1 %v648_v35  ;;  %v650_v41 = vmax.f32 %v512_v36, 0.0 }
  0xf9   : > { %v649_v39 = vmax.f32 %v507_v38, 0.0  ;;  %v1892_v40 = vpop.f32.mrb[6].mxu0 }
  0xfa   : > { %v522_v42 = vadd.f32 %v1892_v40, %v2730_v22  ;;  %v516_v43 = vpop.f32.mrb[7].mxu0 }
  0xfb   : > { %v517_v44 = vadd.f32 %v2730_v22, %v516_v43  ;;  %1967 = vmatprep.mubr.f32.mxu1 %v649_v39 }
  0xfc   : > { %1968 = vmatmul.mubr.f32.gmra.mrb[4].mxu1 %v650_v41  ;;  %v652_v47 = vmax.f32 %v522_v42, 0.0 }
  0xfd   : > { %v651_v45 = vmax.f32 %v517_v44, 0.0  ;;  %v1895_v46 = vpop.f32.mrb[8].mxu0 }
  0xfe   : > { %v532_v48 = vadd.f32 %v1895_v46, %v2730_v22  ;;  %v526_v49 = vpop.f32.mrb[9].mxu0 }
  0xff   : > { %v527_v50 = vadd.f32 %v2730_v22, %v526_v49  ;;  %1970 = vmatprep.mubr.f32.mxu1 %v651_v45 }
 0x100   : > { %1971 = vmatmul.mubr.f32.gmra.mrb[6].mxu1 %v652_v47  ;;  %v654_v53 = vmax.f32 %v532_v48, 0.0 }
 0x101   : > { %v653_v51 = vmax.f32 %v527_v50, 0.0  ;;  %v1898_v52 = vpop.f32.mrb[10].mxu0 }
 0x102   : > { %v542_v54 = vadd.f32 %v1898_v52, %v2730_v22  ;;  %v536_v55 = vpop.f32.mrb[11].mxu0 }
 0x103   : > { %v537_v56 = vadd.f32 %v2730_v22, %v536_v55  ;;  %1973 = vmatprep.mubr.f32.mxu1 %v653_v51 }
 0x104   : > { %1974 = vmatmul.mubr.f32.gmra.mrb[8].mxu1 %v654_v53  ;;  %v656_v59 = vmax.f32 %v542_v54, 0.0 }
 0x105   : > { %v655_v57 = vmax.f32 %v537_v56, 0.0  ;;  %v1901_v58 = vpop.f32.mrb[12].mxu0  ;;  %v1239_v56 = vld [vmem:[%s3041_s5] sm:$0xff] }
 0x106   : > { %v552_v60 = vadd.f32 %v1901_v58, %v2730_v22  ;;  %v546_v61 = vpop.f32.mrb[13].mxu0  ;;  %v1241_v58 = vld [vmem:[%s3041_s5 + $0x10] sm:$0xff] }
 0x107   : > { %v547_v62 = vadd.f32 %v2730_v22, %v546_v61  ;;  %1976 = vmatprep.mubr.f32.mxu1 %v655_v57  ;;  %v1240_v57 = vld [vmem:[%s3041_s5 + $0x8] sm:$0xff]  ;;  %v1243_v61 = vld [vmem:[%s3041_s5 + $0x20] sm:$0xff] }
 0x108   : > { %1977 = vmatmul.mubr.f32.gmra.mrb[10].mxu1 %v656_v59  ;;  %v658_v1 = vmax.f32 %v552_v60, 0.0  ;;  %v2241_v59 = vpack.c.bf16 %v1240_v57, %v1239_v56 }
 0x109   : > { %v657_v63 = vmax.f32 %v547_v62, 0.0  ;;  %v1904_v0 = vpop.f32.mrb[14].mxu0  ;;  %v1244_v62 = vld [vmem:[%s3041_s5 + $0x28] sm:$0xff] }
 0x10a   : > { %v562_v2 = vadd.f32 %v1904_v0, %v2730_v22  ;;  %v556_v3 = vpop.f32.mrb[15].mxu0  ;;  %2273 = vmatprep.subr.bf16.mxu1 %v2241_v59  ;;  %2242 = vmatprep.subr.bf16.mxu0 %v2241_v59  ;;  %v1245_v0 = vld [vmem:[%s3041_s5 + $0x30] sm:$0xff] }
 0x10b   : > { %v557_v4 = vadd.f32 %v2730_v22, %v556_v3  ;;  %1979 = vmatprep.mubr.f32.mxu1 %v657_v63  ;;  %2281 = vmatpush3.bf16.msra.mxu1 %v2241_v59  ;;  %v2249_v63 = vpack.c.bf16 %v1244_v62, %v1243_v61  ;;  %v1247_v3 = vld [vmem:[%s3041_s5 + $0x40] sm:$0xff] }
 0x10c   : > { %1980 = vmatmul.mubr.f32.gmra.mrb[12].mxu1 %v658_v1  ;;  %v660_v7 = vmax.f32 %v562_v2, 0.0  ;;  %v1246_v1 = vld [vmem:[%s3041_s5 + $0x38] sm:$0xff] }
 0x10d   : > { %v659_v5 = vmax.f32 %v557_v4, 0.0  ;;  %v1907_v6 = vpop.f32.mrb[16].mxu0  ;;  %v2788_v2 = vpack.c.bf16 %v1246_v1, %v1245_v0  ;;  %v1248_v4 = vld [vmem:[%s3041_s5 + $0x48] sm:$0xff] }
 0x10e   : > { %v572_v8 = vadd.f32 %v1907_v6, %v2730_v22  ;;  %v566_v9 = vpop.f32.mrb[17].mxu0  ;;  %v1249_v6 = vld [vmem:[%s3041_s5 + $0x50] sm:$0xff] }
 0x10f   : > { %v567_v10 = vadd.f32 %v2730_v22, %v566_v9  ;;  %1982 = vmatprep.mubr.f32.mxu1 %v659_v5  ;;  %v2797_v5 = vpack.c.bf16 %v1248_v4, %v1247_v3  ;;  %v1251_v9 = vld [vmem:[%s3041_s5 + $0x60] sm:$0xff] }
 0x110   : > { %1983 = vmatmul.mubr.f32.gmra.mrb[14].mxu1 %v660_v7  ;;  %v662_v13 = vmax.f32 %v572_v8, 0.0  ;;  %v1250_v7 = vld [vmem:[%s3041_s5 + $0x58] sm:$0xff] }
 0x111   : > { %v661_v11 = vmax.f32 %v567_v10, 0.0  ;;  %v1910_v12 = vpop.f32.mrb[18].mxu0  ;;  %v2807_v8 = vpack.c.bf16 %v1250_v7, %v1249_v6  ;;  %v1252_v10 = vld [vmem:[%s3041_s5 + $0x68] sm:$0xff] }
 0x112   : > { %v582_v14 = vadd.f32 %v1910_v12, %v2730_v22  ;;  %v576_v15 = vpop.f32.mrb[19].mxu0  ;;  %v2825_v12 = vld [vmem:[%s3040_s4] ss:$0 sm:$0xff] }
 0x113   : > { %v577_v16 = vadd.f32 %v2730_v22, %v576_v15  ;;  %1985 = vmatprep.mubr.f32.mxu1 %v661_v11  ;;  %v2817_v11 = vpack.c.bf16 %v1252_v10, %v1251_v9 }
 0x114   : > { %1986 = vmatmul.mubr.f32.gmra.mrb[16].mxu1 %v662_v13  ;;  %v664_v19 = vmax.f32 %v582_v14, 0.0 }
 0x115   : > { %v663_v17 = vmax.f32 %v577_v16, 0.0  ;;  %v1913_v18 = vpop.f32.mrb[20].mxu0 }
 0x116   : > { %v592_v20 = vadd.f32 %v1913_v18, %v2730_v22  ;;  %v586_v21 = vpop.f32.mrb[21].mxu0 }
 0x117   : > { %v587_v23 = vadd.f32 %v2730_v22, %v586_v21  ;;  %1988 = vmatprep.mubr.f32.mxu1 %v663_v17 }
 0x118   : > { %1989 = vmatmul.mubr.f32.gmra.mrb[18].mxu1 %v664_v19  ;;  %v666_v26 = vmax.f32 %v592_v20, 0.0 }
 0x119   : > { %v665_v24 = vmax.f32 %v587_v23, 0.0  ;;  %v1916_v25 = vpop.f32.mrb[22].mxu0 }
 0x11a   : > { %v602_v27 = vadd.f32 %v1916_v25, %v2730_v22  ;;  %v596_v28 = vpop.f32.mrb[23].mxu0 }
 0x11b   : > { %v597_v29 = vadd.f32 %v2730_v22, %v596_v28  ;;  %1991 = vmatprep.mubr.f32.mxu1 %v665_v24 }
 0x11c   : > { %1992 = vmatmul.mubr.f32.gmra.mrb[20].mxu1 %v666_v26  ;;  %v668_v32 = vmax.f32 %v602_v27, 0.0 }
 0x11d   : > { %v667_v30 = vmax.f32 %v597_v29, 0.0  ;;  %v1919_v31 = vpop.f32.mrb[24].mxu0 }
 0x11e   : > { %v612_v33 = vadd.f32 %v1919_v31, %v2730_v22  ;;  %v606_v34 = vpop.f32.mrb[25].mxu0 }
 0x11f   : > { %v607_v35 = vadd.f32 %v2730_v22, %v606_v34  ;;  %1994 = vmatprep.mubr.f32.mxu1 %v667_v30 }
 0x120   : > { %1995 = vmatmul.mubr.f32.gmra.mrb[22].mxu1 %v668_v32  ;;  %v670_v38 = vmax.f32 %v612_v33, 0.0 }
 0x121   : > { %v669_v36 = vmax.f32 %v607_v35, 0.0  ;;  %v1922_v37 = vpop.f32.mrb[26].mxu0 }
 0x122   : > { %v622_v39 = vadd.f32 %v1922_v37, %v2730_v22  ;;  %v616_v40 = vpop.f32.mrb[27].mxu0 }
 0x123   : > { %v617_v41 = vadd.f32 %v2730_v22, %v616_v40  ;;  %1997 = vmatprep.mubr.f32.mxu1 %v669_v36 }
 0x124   : > { %1998 = vmatmul.mubr.f32.gmra.mrb[24].mxu1 %v670_v38  ;;  %v672_v44 = vmax.f32 %v622_v39, 0.0 }
 0x125   : > { %v671_v42 = vmax.f32 %v617_v41, 0.0  ;;  %v1925_v43 = vpop.f32.mrb[28].mxu0 }
 0x126   : > { %v632_v45 = vadd.f32 %v1925_v43, %v2730_v22  ;;  %v626_v46 = vpop.f32.mrb[29].mxu0 }
 0x127   : > { %v627_v47 = vadd.f32 %v2730_v22, %v626_v46  ;;  %2000 = vmatprep.mubr.f32.mxu1 %v671_v42 }
 0x128   : > { %2001 = vmatmul.mubr.f32.gmra.mrb[26].mxu1 %v672_v44  ;;  %v674_v50 = vmax.f32 %v632_v45, 0.0 }
 0x129   : > { %v673_v48 = vmax.f32 %v627_v47, 0.0  ;;  %v1928_v49 = vpop.f32.mrb[30].mxu0 }
 0x12a   : > { %v642_v51 = vadd.f32 %v1928_v49, %v2730_v22  ;;  %v636_v52 = vpop.f32.mrb[31].mxu0 }
 0x12b   : > { %v637_v53 = vadd.f32 %v2730_v22, %v636_v52  ;;  %2003 = vmatprep.mubr.f32.mxu1 %v673_v48  ;;  %v1242_v22 = vld [vmem:[%s3041_s5 + $0x18] sm:$0xff] }
 0x12c   : > { %2004 = vmatmul.mubr.f32.gmra.mrb[28].mxu1 %v674_v50  ;;  %v676_v55 = vmax.f32 %v642_v51, 0.0  ;;  %v2245_v60 = vpack.c.bf16 %v1242_v22, %v1241_v58 }
 0x12d   : > { %v675_v54 = vmax.f32 %v637_v53, 0.0 }
 0x12e   : > { %2274 = vmatprep.subr.bf16.mxu1 %v2245_v60 }
 0x12f   : > { %2006 = vmatprep.mubr.f32.mxu1 %v675_v54  ;;  %2282 = vmatpush3.bf16.msra.mxu1 %v2245_v60 }
 0x130   : > { %2007 = vmatmul.mubr.f32.gmra.mrb[30].mxu1 %v676_v55  ;;  %2275 = vmatprep.subr.bf16.mxu1 %v2249_v63 }
 0x133   : > { %2283 = vmatpush3.bf16.msra.mxu1 %v2249_v63 }
 0x134   : > { %2276 = vmatprep.subr.bf16.mxu1 %v2788_v2 }
 0x137   : > { %2284 = vmatpush3.bf16.msra.mxu1 %v2788_v2 }
 0x138   : > { %2277 = vmatprep.subr.bf16.mxu1 %v2797_v5 }
 0x13b   : > { %2285 = vmatpush3.bf16.msra.mxu1 %v2797_v5 }
 0x13c   : > { %2278 = vmatprep.subr.bf16.mxu1 %v2807_v8 }
 0x13f   : > { %2286 = vmatpush3.bf16.msra.mxu1 %v2807_v8 }
 0x140   : > { %2279 = vmatprep.subr.bf16.mxu1 %v2817_v11 }
 0x143   : > { %2287 = vmatpush3.bf16.msra.mxu1 %v2817_v11 }
 0x1c7   : > { %v1963_v13 = vpop.f32.mrb[0].mxu1 }
 0x1c8   : > { %v772_v14 = vadd.f32 %v1963_v13, %v2825_v12  ;;  %v766_v15 = vpop.f32.mrb[1].mxu1 }
 0x1c9   : > { %v767_v16 = vadd.f32 %v2825_v12, %v766_v15 }
 0x1ca   : > { %v926_v19 = vmax.f32 %v772_v14, 0.0 }
 0x1cb   : > { %v925_v17 = vmax.f32 %v767_v16, 0.0  ;;  %v1966_v18 = vpop.f32.mrb[2].mxu1 }
 0x1cc   : > { %v782_v20 = vadd.f32 %v1966_v18, %v2825_v12  ;;  %v776_v21 = vpop.f32.mrb[3].mxu1 }
 0x1cd   : > { %v777_v23 = vadd.f32 %v2825_v12, %v776_v21  ;;  %2041 = vmatprep.mubr.f32.mxu0 %v925_v17 }
 0x1ce   : > { %2042 = vmatmul.mubr.f32.vlgmr.msra.gmra.mrb[32].mxu0 %v926_v19  ;;  %v928_v26 = vmax.f32 %v782_v20, 0.0 }
 0x1cf   : > { %v927_v24 = vmax.f32 %v777_v23, 0.0  ;;  %v1969_v25 = vpop.f32.mrb[4].mxu1  ;;  %2244 = vmatpush3.bf16.msra.mxu0 %v2241_v59 }
 0x1d0   : > { %v792_v27 = vadd.f32 %v1969_v25, %v2825_v12  ;;  %v786_v28 = vpop.f32.mrb[5].mxu1  ;;  %2246 = vmatprep.subr.bf16.mxu0 %v2245_v60 }
 0x1d1   : > { %v787_v29 = vadd.f32 %v2825_v12, %v786_v28  ;;  %2044 = vmatprep.mubr.f32.mxu0 %v927_v24 }
 0x1d2   : > { %2045 = vmatmul.mubr.f32.gmra.mrb[34].mxu0 %v928_v26  ;;  %v930_v32 = vmax.f32 %v792_v27, 0.0 }
 0x1d3   : > { %v929_v30 = vmax.f32 %v787_v29, 0.0  ;;  %v1972_v31 = vpop.f32.mrb[6].mxu1  ;;  %2248 = vmatpush3.bf16.msra.mxu0 %v2245_v60 }
 0x1d4   : > { %v802_v33 = vadd.f32 %v1972_v31, %v2825_v12  ;;  %v796_v34 = vpop.f32.mrb[7].mxu1  ;;  %2250 = vmatprep.subr.bf16.mxu0 %v2249_v63 }
 0x1d5   : > { %v797_v35 = vadd.f32 %v2825_v12, %v796_v34  ;;  %2047 = vmatprep.mubr.f32.mxu0 %v929_v30 }
 0x1d6   : > { %2048 = vmatmul.mubr.f32.gmra.mrb[36].mxu0 %v930_v32  ;;  %v932_v38 = vmax.f32 %v802_v33, 0.0 }
 0x1d7   : > { %v931_v36 = vmax.f32 %v797_v35, 0.0  ;;  %v1975_v37 = vpop.f32.mrb[8].mxu1  ;;  %2252 = vmatpush3.bf16.msra.mxu0 %v2249_v63 }
 0x1d8   : > { %v812_v39 = vadd.f32 %v1975_v37, %v2825_v12  ;;  %v806_v40 = vpop.f32.mrb[9].mxu1  ;;  %2254 = vmatprep.subr.bf16.mxu0 %v2788_v2 }
 0x1d9   : > { %v807_v41 = vadd.f32 %v2825_v12, %v806_v40  ;;  %2050 = vmatprep.mubr.f32.mxu0 %v931_v36 }
 0x1da   : > { %2051 = vmatmul.mubr.f32.gmra.mrb[38].mxu0 %v932_v38  ;;  %v934_v44 = vmax.f32 %v812_v39, 0.0 }
 0x1db   : > { %v933_v42 = vmax.f32 %v807_v41, 0.0  ;;  %v1978_v43 = vpop.f32.mrb[10].mxu1  ;;  %2256 = vmatpush3.bf16.msra.mxu0 %v2788_v2 }
 0x1dc   : > { %v822_v45 = vadd.f32 %v1978_v43, %v2825_v12  ;;  %v816_v46 = vpop.f32.mrb[11].mxu1  ;;  %2258 = vmatprep.subr.bf16.mxu0 %v2797_v5 }
 0x1dd   : > { %v817_v47 = vadd.f32 %v2825_v12, %v816_v46  ;;  %2053 = vmatprep.mubr.f32.mxu0 %v933_v42 }
 0x1de   : > { %2054 = vmatmul.mubr.f32.gmra.mrb[40].mxu0 %v934_v44  ;;  %v936_v50 = vmax.f32 %v822_v45, 0.0 }
 0x1df   : > { %v935_v48 = vmax.f32 %v817_v47, 0.0  ;;  %v1981_v49 = vpop.f32.mrb[12].mxu1  ;;  %2260 = vmatpush3.bf16.msra.mxu0 %v2797_v5  ;;  %v1253_v47 = vld [vmem:[%s3041_s5 + $0x70] sm:$0xff] }
 0x1e0   : > { %v832_v51 = vadd.f32 %v1981_v49, %v2825_v12  ;;  %v826_v52 = vpop.f32.mrb[13].mxu1  ;;  %2262 = vmatprep.subr.bf16.mxu0 %v2807_v8 }
 0x1e1   : > { %v827_v53 = vadd.f32 %v2825_v12, %v826_v52  ;;  %2056 = vmatprep.mubr.f32.mxu0 %v935_v48  ;;  %v1254_v48 = vld [vmem:[%s3041_s5 + $0x78] sm:$0xff] }
 0x1e2   : > { %2057 = vmatmul.mubr.f32.gmra.mrb[42].mxu0 %v936_v50  ;;  %v938_v56 = vmax.f32 %v832_v51, 0.0  ;;  %v2269_v49 = vpack.c.bf16 %v1254_v48, %v1253_v47 }
 0x1e3   : > { %v937_v54 = vmax.f32 %v827_v53, 0.0  ;;  %v1984_v55 = vpop.f32.mrb[14].mxu1  ;;  %2264 = vmatpush3.bf16.msra.mxu0 %v2807_v8 }
 0x1e4   : > { %v842_v57 = vadd.f32 %v1984_v55, %v2825_v12  ;;  %v836_v58 = vpop.f32.mrb[15].mxu1  ;;  %2266 = vmatprep.subr.bf16.mxu0 %v2817_v11  ;;  %2280 = vmatprep.subr.bf16.mxu1 %v2269_v49 }
 0x1e5   : > { %v837_v59 = vadd.f32 %v2825_v12, %v836_v58  ;;  %2059 = vmatprep.mubr.f32.mxu0 %v937_v54  ;;  %2288 = vmatpush3.bf16.msra.mxu1 %v2269_v49 }
 0x1e6   : > { %2060 = vmatmul.mubr.f32.gmra.mrb[44].mxu0 %v938_v56  ;;  %v940_v61 = vmax.f32 %v842_v57, 0.0 }
 0x1e7   : > { %v939_v22 = vmax.f32 %v837_v59, 0.0  ;;  %v1987_v60 = vpop.f32.mrb[16].mxu1  ;;  %2268 = vmatpush3.bf16.msra.mxu0 %v2817_v11 }
 0x1e8   : > { %v852_v62 = vadd.f32 %v1987_v60, %v2825_v12  ;;  %v846_v63 = vpop.f32.mrb[17].mxu1  ;;  %2270 = vmatprep.subr.bf16.mxu0 %v2269_v49 }
 0x1e9   : > { %v847_v0 = vadd.f32 %v2825_v12, %v846_v63  ;;  %2062 = vmatprep.mubr.f32.mxu0 %v939_v22 }
 0x1ea   : > { %2063 = vmatmul.mubr.f32.gmra.mrb[46].mxu0 %v940_v61  ;;  %v942_v3 = vmax.f32 %v852_v62, 0.0 }
 0x1eb   : > { %v941_v1 = vmax.f32 %v847_v0, 0.0  ;;  %v1990_v2 = vpop.f32.mrb[18].mxu1  ;;  %2272 = vmatpush3.bf16.msra.mxu0 %v2269_v49 }
 0x1ec   : > { %v862_v4 = vadd.f32 %v1990_v2, %v2825_v12  ;;  %v856_v5 = vpop.f32.mrb[19].mxu1 }
 0x1ed   : > { %v857_v6 = vadd.f32 %v2825_v12, %v856_v5  ;;  %2065 = vmatprep.mubr.f32.mxu0 %v941_v1 }
 0x1ee   : > { %2066 = vmatmul.mubr.f32.gmra.mrb[48].mxu0 %v942_v3  ;;  %v944_v9 = vmax.f32 %v862_v4, 0.0 }
 0x1ef   : > { %v943_v7 = vmax.f32 %v857_v6, 0.0  ;;  %v1993_v8 = vpop.f32.mrb[20].mxu1 }
 0x1f0   : > { %v872_v10 = vadd.f32 %v1993_v8, %v2825_v12  ;;  %v866_v11 = vpop.f32.mrb[21].mxu1 }
 0x1f1   : > { %v867_v13 = vadd.f32 %v2825_v12, %v866_v11  ;;  %2068 = vmatprep.mubr.f32.mxu0 %v943_v7 }
 0x1f2   : > { %2069 = vmatmul.mubr.f32.gmra.mrb[50].mxu0 %v944_v9  ;;  %v946_v16 = vmax.f32 %v872_v10, 0.0 }
 0x1f3   : > { %v945_v14 = vmax.f32 %v867_v13, 0.0  ;;  %v1996_v15 = vpop.f32.mrb[22].mxu1 }
 0x1f4   : > { %v882_v17 = vadd.f32 %v1996_v15, %v2825_v12  ;;  %v876_v18 = vpop.f32.mrb[23].mxu1 }
 0x1f5   : > { %v877_v19 = vadd.f32 %v2825_v12, %v876_v18  ;;  %2071 = vmatprep.mubr.f32.mxu0 %v945_v14 }
 0x1f6   : > { %2072 = vmatmul.mubr.f32.gmra.mrb[52].mxu0 %v946_v16  ;;  %v948_v23 = vmax.f32 %v882_v17, 0.0 }
 0x1f7   : > { %v947_v20 = vmax.f32 %v877_v19, 0.0  ;;  %v1999_v21 = vpop.f32.mrb[24].mxu1 }
 0x1f8   : > { %v892_v24 = vadd.f32 %v1999_v21, %v2825_v12  ;;  %v886_v25 = vpop.f32.mrb[25].mxu1 }
 0x1f9   : > { %v887_v26 = vadd.f32 %v2825_v12, %v886_v25  ;;  %2074 = vmatprep.mubr.f32.mxu0 %v947_v20 }
 0x1fa   : > { %2075 = vmatmul.mubr.f32.gmra.mrb[54].mxu0 %v948_v23  ;;  %v950_v29 = vmax.f32 %v892_v24, 0.0 }
 0x1fb   : > { %v949_v27 = vmax.f32 %v887_v26, 0.0  ;;  %v2002_v28 = vpop.f32.mrb[26].mxu1 }
 0x1fc   : > { %v902_v30 = vadd.f32 %v2002_v28, %v2825_v12  ;;  %v896_v31 = vpop.f32.mrb[27].mxu1 }
 0x1fd   : > { %v897_v32 = vadd.f32 %v2825_v12, %v896_v31  ;;  %2077 = vmatprep.mubr.f32.mxu0 %v949_v27 }
 0x1fe   : > { %2078 = vmatmul.mubr.f32.gmra.mrb[56].mxu0 %v950_v29  ;;  %v952_v35 = vmax.f32 %v902_v30, 0.0 }
 0x1ff   : > { %v951_v33 = vmax.f32 %v897_v32, 0.0  ;;  %v2005_v34 = vpop.f32.mrb[28].mxu1 }
 0x200   : > { %v912_v36 = vadd.f32 %v2005_v34, %v2825_v12  ;;  %v906_v37 = vpop.f32.mrb[29].mxu1 }
 0x201   : > { %v907_v38 = vadd.f32 %v2825_v12, %v906_v37  ;;  %2080 = vmatprep.mubr.f32.mxu0 %v951_v33 }
 0x202   : > { %2081 = vmatmul.mubr.f32.gmra.mrb[58].mxu0 %v952_v35  ;;  %v954_v41 = vmax.f32 %v912_v36, 0.0 }
 0x203   : > { %v953_v39 = vmax.f32 %v907_v38, 0.0  ;;  %v2008_v40 = vpop.f32.mrb[30].mxu1 }
 0x204   : > { %v922_v42 = vadd.f32 %v2008_v40, %v2825_v12  ;;  %v916_v43 = vpop.f32.mrb[31].mxu1 }
 0x205   : > { %v917_v44 = vadd.f32 %v2825_v12, %v916_v43  ;;  %2083 = vmatprep.mubr.f32.mxu0 %v953_v39  ;;  %v2876_v12 = vld [vmem:[%s3040_s4 + $0x1] ss:$0 sm:$0xff] }
 0x206   : > { %2084 = vmatmul.mubr.f32.gmra.mrb[60].mxu0 %v954_v41  ;;  %v956_v46 = vmax.f32 %v922_v42, 0.0 }
 0x207   : > { %v955_v45 = vmax.f32 %v917_v44, 0.0 }
 0x209   : > { %2086 = vmatprep.mubr.f32.mxu0 %v955_v45 }
 0x20a   : > { %2087 = vmatmul.mubr.f32.gmra.mrb[62].mxu0 %v956_v46 }
 0x2a1   : > { %v2043_v50 = vpop.f32.mrb[32].mxu0 }
 0x2a2   : > { %v1054_v51 = vadd.f32 %v2043_v50, %v2876_v12  ;;  %v1048_v52 = vpop.f32.mrb[33].mxu0 }
 0x2a3   : > { %v1049_v53 = vadd.f32 %v2876_v12, %v1048_v52 }
 0x2a4   : > { %v1208_v56 = vmax.f32 %v1054_v51, 0.0 }
 0x2a5   : > { %v1207_v54 = vmax.f32 %v1049_v53, 0.0  ;;  %v2046_v55 = vpop.f32.mrb[34].mxu0 }
 0x2a6   : > { %v1064_v57 = vadd.f32 %v2046_v55, %v2876_v12  ;;  %v1058_v58 = vpop.f32.mrb[35].mxu0 }
 0x2a7   : > { %v1059_v59 = vadd.f32 %v2876_v12, %v1058_v58  ;;  %2121 = vmatprep.mubr.f32.mxu0 %v1207_v54 }
 0x2a8   : > { %2122 = vmatmul.mubr.f32.vlgmr.msra.gmra.mrb[64].mxu0 %v1208_v56  ;;  %v1210_v61 = vmax.f32 %v1064_v57, 0.0 }
 0x2a9   : > { %v1209_v22 = vmax.f32 %v1059_v59, 0.0  ;;  %v2049_v60 = vpop.f32.mrb[36].mxu0 }
 0x2aa   : > { %v1074_v62 = vadd.f32 %v2049_v60, %v2876_v12  ;;  %v1068_v63 = vpop.f32.mrb[37].mxu0 }
 0x2ab   : > { %v1069_v0 = vadd.f32 %v2876_v12, %v1068_v63  ;;  %2124 = vmatprep.mubr.f32.mxu0 %v1209_v22 }
 0x2ac   : > { %2125 = vmatmul.mubr.f32.gmra.mrb[66].mxu0 %v1210_v61  ;;  %v1212_v3 = vmax.f32 %v1074_v62, 0.0 }
 0x2ad   : > { %v1211_v1 = vmax.f32 %v1069_v0, 0.0  ;;  %v2052_v2 = vpop.f32.mrb[38].mxu0 }
 0x2ae   : > { %v1084_v4 = vadd.f32 %v2052_v2, %v2876_v12  ;;  %v1078_v5 = vpop.f32.mrb[39].mxu0 }
 0x2af   : > { %v1079_v6 = vadd.f32 %v2876_v12, %v1078_v5  ;;  %2127 = vmatprep.mubr.f32.mxu0 %v1211_v1 }
 0x2b0   : > { %2128 = vmatmul.mubr.f32.gmra.mrb[68].mxu0 %v1212_v3  ;;  %v1214_v9 = vmax.f32 %v1084_v4, 0.0 }
 0x2b1   : > { %v1213_v7 = vmax.f32 %v1079_v6, 0.0  ;;  %v2055_v8 = vpop.f32.mrb[40].mxu0 }
 0x2b2   : > { %v1094_v10 = vadd.f32 %v2055_v8, %v2876_v12  ;;  %v1088_v11 = vpop.f32.mrb[41].mxu0 }
 0x2b3   : > { %v1089_v13 = vadd.f32 %v2876_v12, %v1088_v11  ;;  %2130 = vmatprep.mubr.f32.mxu1 %v1213_v7 }
 0x2b4   : > { %2131 = vmatmul.mubr.f32.vlgmr.msra.gmra.mrb[32].mxu1 %v1214_v9  ;;  %v1216_v16 = vmax.f32 %v1094_v10, 0.0 }
 0x2b5   : > { %v1215_v14 = vmax.f32 %v1089_v13, 0.0  ;;  %v2058_v15 = vpop.f32.mrb[42].mxu0 }
 0x2b6   : > { %v1104_v17 = vadd.f32 %v2058_v15, %v2876_v12  ;;  %v1098_v18 = vpop.f32.mrb[43].mxu0 }
 0x2b7   : > { %v1099_v19 = vadd.f32 %v2876_v12, %v1098_v18  ;;  %2133 = vmatprep.mubr.f32.mxu1 %v1215_v14 }
 0x2b8   : > { %2134 = vmatmul.mubr.f32.gmra.mrb[34].mxu1 %v1216_v16  ;;  %v1218_v23 = vmax.f32 %v1104_v17, 0.0 }
 0x2b9   : > { %v1217_v20 = vmax.f32 %v1099_v19, 0.0  ;;  %v2061_v21 = vpop.f32.mrb[44].mxu0  ;;  %v2913_v19 = vld [vmem:[%s3042_s6] ss:$0 sm:$0xff] }
 0x2ba   : > { %v1114_v24 = vadd.f32 %v2061_v21, %v2876_v12  ;;  %v1108_v25 = vpop.f32.mrb[45].mxu0 }
 0x2bb   : > { %v1109_v26 = vadd.f32 %v2876_v12, %v1108_v25  ;;  %2136 = vmatprep.mubr.f32.mxu1 %v1217_v20 }
 0x2bc   : > { %2137 = vmatmul.mubr.f32.gmra.mrb[36].mxu1 %v1218_v23  ;;  %v1220_v29 = vmax.f32 %v1114_v24, 0.0 }
 0x2bd   : > { %v1219_v27 = vmax.f32 %v1109_v26, 0.0  ;;  %v2064_v28 = vpop.f32.mrb[46].mxu0 }
 0x2be   : > { %v1124_v30 = vadd.f32 %v2064_v28, %v2876_v12  ;;  %v1118_v31 = vpop.f32.mrb[47].mxu0 }
 0x2bf   : > { %v1119_v32 = vadd.f32 %v2876_v12, %v1118_v31  ;;  %2139 = vmatprep.mubr.f32.mxu1 %v1219_v27 }
 0x2c0   : > { %2140 = vmatmul.mubr.f32.gmra.mrb[38].mxu1 %v1220_v29  ;;  %v1222_v35 = vmax.f32 %v1124_v30, 0.0 }
 0x2c1   : > { %v1221_v33 = vmax.f32 %v1119_v32, 0.0  ;;  %v2067_v34 = vpop.f32.mrb[48].mxu0 }
 0x2c2   : > { %v1134_v36 = vadd.f32 %v2067_v34, %v2876_v12  ;;  %v1128_v37 = vpop.f32.mrb[49].mxu0 }
 0x2c3   : > { %v1129_v38 = vadd.f32 %v2876_v12, %v1128_v37  ;;  %2142 = vmatprep.mubr.f32.mxu1 %v1221_v33 }
 0x2c4   : > { %2143 = vmatmul.mubr.f32.gmra.mrb[40].mxu1 %v1222_v35  ;;  %v1224_v41 = vmax.f32 %v1134_v36, 0.0 }
 0x2c5   : > { %v1223_v39 = vmax.f32 %v1129_v38, 0.0  ;;  %v2070_v40 = vpop.f32.mrb[50].mxu0 }
 0x2c6   : > { %v1144_v42 = vadd.f32 %v2070_v40, %v2876_v12  ;;  %v1138_v43 = vpop.f32.mrb[51].mxu0 }
 0x2c7   : > { %v1139_v44 = vadd.f32 %v2876_v12, %v1138_v43  ;;  %2145 = vmatprep.mubr.f32.mxu1 %v1223_v39 }
 0x2c8   : > { %2146 = vmatmul.mubr.f32.gmra.mrb[42].mxu1 %v1224_v41  ;;  %v1226_v47 = vmax.f32 %v1144_v42, 0.0 }
 0x2c9   : > { %v1225_v45 = vmax.f32 %v1139_v44, 0.0  ;;  %v2073_v46 = vpop.f32.mrb[52].mxu0 }
 0x2ca   : > { %v1154_v48 = vadd.f32 %v2073_v46, %v2876_v12  ;;  %v1148_v49 = vpop.f32.mrb[53].mxu0 }
 0x2cb   : > { %v1149_v50 = vadd.f32 %v2876_v12, %v1148_v49  ;;  %2148 = vmatprep.mubr.f32.mxu1 %v1225_v45 }
 0x2cc   : > { %2149 = vmatmul.mubr.f32.gmra.mrb[44].mxu1 %v1226_v47  ;;  %v1228_v53 = vmax.f32 %v1154_v48, 0.0 }
 0x2cd   : > { %v1227_v51 = vmax.f32 %v1149_v50, 0.0  ;;  %v2076_v52 = vpop.f32.mrb[54].mxu0 }
 0x2ce   : > { %v1164_v54 = vadd.f32 %v2076_v52, %v2876_v12  ;;  %v1158_v55 = vpop.f32.mrb[55].mxu0 }
 0x2cf   : > { %v1159_v56 = vadd.f32 %v2876_v12, %v1158_v55  ;;  %2151 = vmatprep.mubr.f32.mxu1 %v1227_v51 }
 0x2d0   : > { %2152 = vmatmul.mubr.f32.gmra.mrb[46].mxu1 %v1228_v53  ;;  %v1230_v59 = vmax.f32 %v1164_v54, 0.0 }
 0x2d1   : > { %v1229_v57 = vmax.f32 %v1159_v56, 0.0  ;;  %v2079_v58 = vpop.f32.mrb[56].mxu0 }
 0x2d2   : > { %v1174_v22 = vadd.f32 %v2079_v58, %v2876_v12  ;;  %v1168_v60 = vpop.f32.mrb[57].mxu0 }
 0x2d3   : > { %v1169_v61 = vadd.f32 %v2876_v12, %v1168_v60  ;;  %2154 = vmatprep.mubr.f32.mxu1 %v1229_v57 }
 0x2d4   : > { %2155 = vmatmul.mubr.f32.gmra.mrb[48].mxu1 %v1230_v59  ;;  %v1232_v0 = vmax.f32 %v1174_v22, 0.0 }
 0x2d5   : > { %v1231_v62 = vmax.f32 %v1169_v61, 0.0  ;;  %v2082_v63 = vpop.f32.mrb[58].mxu0 }
 0x2d6   : > { %v1184_v1 = vadd.f32 %v2082_v63, %v2876_v12  ;;  %v1178_v2 = vpop.f32.mrb[59].mxu0 }
 0x2d7   : > { %v1179_v3 = vadd.f32 %v2876_v12, %v1178_v2  ;;  %2157 = vmatprep.mubr.f32.mxu1 %v1231_v62 }
 0x2d8   : > { %2158 = vmatmul.mubr.f32.gmra.mrb[50].mxu1 %v1232_v0  ;;  %v1234_v6 = vmax.f32 %v1184_v1, 0.0 }
 0x2d9   : > { %v1233_v4 = vmax.f32 %v1179_v3, 0.0  ;;  %v2085_v5 = vpop.f32.mrb[60].mxu0 }
 0x2da   : > { %v1194_v7 = vadd.f32 %v2085_v5, %v2876_v12  ;;  %v1188_v8 = vpop.f32.mrb[61].mxu0 }
 0x2db   : > { %v1189_v9 = vadd.f32 %v2876_v12, %v1188_v8  ;;  %2160 = vmatprep.mubr.f32.mxu1 %v1233_v4 }
 0x2dc   : > { %2161 = vmatmul.mubr.f32.gmra.mrb[52].mxu1 %v1234_v6  ;;  %v1236_v13 = vmax.f32 %v1194_v7, 0.0 }
 0x2dd   : > { %v1235_v10 = vmax.f32 %v1189_v9, 0.0  ;;  %v2088_v11 = vpop.f32.mrb[62].mxu0 }
 0x2de   : > { %v1204_v14 = vadd.f32 %v2088_v11, %v2876_v12  ;;  %v1198_v15 = vpop.f32.mrb[63].mxu0 }
 0x2df   : > { %v1199_v16 = vadd.f32 %v2876_v12, %v1198_v15  ;;  %2163 = vmatprep.mubr.f32.mxu1 %v1235_v10 }
 0x2e0   : > { %2164 = vmatmul.mubr.f32.gmra.mrb[54].mxu1 %v1236_v13  ;;  %v1238_v18 = vmax.f32 %v1204_v14, 0.0 }
 0x2e1   : > { %v1237_v17 = vmax.f32 %v1199_v16, 0.0 }
 0x2e3   : > { %2166 = vmatprep.mubr.f32.mxu1 %v1237_v17 }
 0x2e4   : > { %2167 = vmatmul.mubr.f32.gmra.mrb[56].mxu1 %v1238_v18 }
 0x37b   : > { %v2123_v20 = vpop.f32.mrb[64].mxu0 }
 0x37c   : > { %v1334_v21 = vadd.f32 %v2123_v20, %v2913_v19  ;;  %v1328_v23 = vpop.f32.mrb[65].mxu0 }
 0x37d   : > { %v1329_v24 = vadd.f32 %v2913_v19, %v1328_v23 }
 0x37e   : > { %2330 = vtanh.f32 %v1334_v21 }
 0x37f   : > { %2332 = vtanh.f32 %v1329_v24  ;;  %v2126_v12 = vpop.f32.mrb[66].mxu0 }
 0x380   : > { %v1344_v25 = vadd.f32 %v2126_v12, %v2913_v19  ;;  %v1338_v26 = vpop.f32.mrb[67].mxu0 }
 0x381   : > { %v1339_v27 = vadd.f32 %v2913_v19, %v1338_v26 }
 0x382   : > { %2334 = vtanh.f32 %v1344_v25 }
 0x383   : > { %2336 = vtanh.f32 %v1339_v27  ;;  %v2129_v28 = vpop.f32.mrb[68].mxu0 }
 0x384   : > { %v1354_v29 = vadd.f32 %v2129_v28, %v2913_v19  ;;  %v1348_v30 = vpop.f32.mrb[69].mxu0 }
 0x385   : > { %v1349_v31 = vadd.f32 %v2913_v19, %v1348_v30 }
 0x386   : > { %2338 = vtanh.f32 %v1354_v29 }
 0x387   : > { %2340 = vtanh.f32 %v1349_v31  ;;  %v2132_v32 = vpop.f32.mrb[32].mxu1 }
 0x388   : > { %v2331_v33 = vpop.eup %2330  ;;  %v1364_v34 = vadd.f32 %v2132_v32, %v2913_v19  ;;  %v1358_v35 = vpop.f32.mrb[33].mxu1 }
 0x389   : > { %v2333_v36 = vpop.eup %2332  ;;  %1520 = vst [vmem:[%s2925_s29 + $0x8] sm:$0xff] %v2331_v33  ;;  %v1359_v37 = vadd.f32 %v2913_v19, %v1358_v35 }
 0x38a   : > { %1519 = vst [vmem:[%s2925_s29] sm:$0xff] %v2333_v36  ;;  %2342 = vtanh.f32 %v1364_v34 }
 0x38b   : > { %2344 = vtanh.f32 %v1359_v37  ;;  %v2135_v38 = vpop.f32.mrb[34].mxu1 }
 0x38c   : > { %v2335_v39 = vpop.eup %2334  ;;  %v1374_v40 = vadd.f32 %v2135_v38, %v2913_v19  ;;  %v1368_v41 = vpop.f32.mrb[35].mxu1 }
 0x38d   : > { %v2337_v42 = vpop.eup %2336  ;;  %1522 = vst [vmem:[%s2925_s29 + $0x18] sm:$0xff] %v2335_v39  ;;  %v1369_v43 = vadd.f32 %v2913_v19, %v1368_v41 }
 0x38e   : > { %1521 = vst [vmem:[%s2925_s29 + $0x10] sm:$0xff] %v2337_v42  ;;  %2346 = vtanh.f32 %v1374_v40 }
 0x38f   : > { %2348 = vtanh.f32 %v1369_v43  ;;  %v2138_v44 = vpop.f32.mrb[36].mxu1 }
 0x390   : > { %v2339_v45 = vpop.eup %2338  ;;  %v1384_v46 = vadd.f32 %v2138_v44, %v2913_v19  ;;  %v1378_v47 = vpop.f32.mrb[37].mxu1 }
 0x391   : > { %v2341_v48 = vpop.eup %2340  ;;  %1524 = vst [vmem:[%s2925_s29 + $0x28] sm:$0xff] %v2339_v45  ;;  %v1379_v49 = vadd.f32 %v2913_v19, %v1378_v47 }
 0x392   : > { %1523 = vst [vmem:[%s2925_s29 + $0x20] sm:$0xff] %v2341_v48  ;;  %2350 = vtanh.f32 %v1384_v46 }
 0x393   : > { %2352 = vtanh.f32 %v1379_v49  ;;  %v2141_v50 = vpop.f32.mrb[38].mxu1 }
 0x394   : > { %v2343_v51 = vpop.eup %2342  ;;  %v1394_v52 = vadd.f32 %v2141_v50, %v2913_v19  ;;  %v1388_v53 = vpop.f32.mrb[39].mxu1 }
 0x395   : > { %v2345_v54 = vpop.eup %2344  ;;  %1526 = vst [vmem:[%s2925_s29 + $0x38] sm:$0xff] %v2343_v51  ;;  %v1389_v55 = vadd.f32 %v2913_v19, %v1388_v53 }
 0x396   : > { %1525 = vst [vmem:[%s2925_s29 + $0x30] sm:$0xff] %v2345_v54  ;;  %2354 = vtanh.f32 %v1394_v52 }
 0x397   : > { %2356 = vtanh.f32 %v1389_v55  ;;  %v2144_v56 = vpop.f32.mrb[40].mxu1 }
 0x398   : > { %v2347_v57 = vpop.eup %2346  ;;  %v1404_v58 = vadd.f32 %v2144_v56, %v2913_v19  ;;  %v1398_v59 = vpop.f32.mrb[41].mxu1 }
 0x399   : > { %v2349_v22 = vpop.eup %2348  ;;  %1528 = vst [vmem:[%s2925_s29 + $0x48] sm:$0xff] %v2347_v57  ;;  %v1399_v60 = vadd.f32 %v2913_v19, %v1398_v59 }
 0x39a   : > { %1527 = vst [vmem:[%s2925_s29 + $0x40] sm:$0xff] %v2349_v22  ;;  %2358 = vtanh.f32 %v1404_v58 }
 0x39b   : > { %2360 = vtanh.f32 %v1399_v60  ;;  %v2147_v61 = vpop.f32.mrb[42].mxu1 }
 0x39c   : > { %v2351_v62 = vpop.eup %2350  ;;  %v1414_v63 = vadd.f32 %v2147_v61, %v2913_v19  ;;  %v1408_v0 = vpop.f32.mrb[43].mxu1 }
 0x39d   : > { %v2353_v1 = vpop.eup %2352  ;;  %1530 = vst [vmem:[%s2925_s29 + $0x58] sm:$0xff] %v2351_v62  ;;  %v1409_v2 = vadd.f32 %v2913_v19, %v1408_v0 }
 0x39e   : > { %1529 = vst [vmem:[%s2925_s29 + $0x50] sm:$0xff] %v2353_v1  ;;  %2362 = vtanh.f32 %v1414_v63 }
 0x39f   : > { %2364 = vtanh.f32 %v1409_v2  ;;  %v2150_v3 = vpop.f32.mrb[44].mxu1 }
 0x3a0   : > { %v2355_v4 = vpop.eup %2354  ;;  %v1424_v5 = vadd.f32 %v2150_v3, %v2913_v19  ;;  %v1418_v6 = vpop.f32.mrb[45].mxu1 }
 0x3a1   : > { %v2357_v7 = vpop.eup %2356  ;;  %1532 = vst [vmem:[%s2925_s29 + $0x68] sm:$0xff] %v2355_v4  ;;  %v1419_v8 = vadd.f32 %v2913_v19, %v1418_v6 }
 0x3a2   : > { %1531 = vst [vmem:[%s2925_s29 + $0x60] sm:$0xff] %v2357_v7  ;;  %2366 = vtanh.f32 %v1424_v5 }
 0x3a3   : > { %2368 = vtanh.f32 %v1419_v8  ;;  %v2153_v9 = vpop.f32.mrb[46].mxu1 }
 0x3a4   : > { %v2359_v10 = vpop.eup %2358  ;;  %v1434_v11 = vadd.f32 %v2153_v9, %v2913_v19  ;;  %v1428_v13 = vpop.f32.mrb[47].mxu1 }
 0x3a5   : > { %v2361_v14 = vpop.eup %2360  ;;  %1534 = vst [vmem:[%s2925_s29 + $0x78] sm:$0xff] %v2359_v10  ;;  %v1429_v15 = vadd.f32 %v2913_v19, %v1428_v13 }
 0x3a6   : > { %1533 = vst [vmem:[%s2925_s29 + $0x70] sm:$0xff] %v2361_v14  ;;  %2370 = vtanh.f32 %v1434_v11 }
 0x3a7   : > { %2372 = vtanh.f32 %v1429_v15  ;;  %v2156_v16 = vpop.f32.mrb[48].mxu1 }
 0x3a8   : > { %v2363_v17 = vpop.eup %2362  ;;  %v1444_v18 = vadd.f32 %v2156_v16, %v2913_v19  ;;  %v1438_v20 = vpop.f32.mrb[49].mxu1 }
 0x3a9   : > { %v2365_v21 = vpop.eup %2364  ;;  %1536 = vst [vmem:[%s2925_s29 + $0x88] sm:$0xff] %v2363_v17  ;;  %v1439_v23 = vadd.f32 %v2913_v19, %v1438_v20 }
 0x3aa   : > { %1535 = vst [vmem:[%s2925_s29 + $0x80] sm:$0xff] %v2365_v21  ;;  %2374 = vtanh.f32 %v1444_v18 }
 0x3ab   : > { %2376 = vtanh.f32 %v1439_v23  ;;  %v2159_v24 = vpop.f32.mrb[50].mxu1 }
 0x3ac   : > { %v2367_v12 = vpop.eup %2366  ;;  %v1454_v25 = vadd.f32 %v2159_v24, %v2913_v19  ;;  %v1448_v26 = vpop.f32.mrb[51].mxu1 }
 0x3ad   : > { %v2369_v27 = vpop.eup %2368  ;;  %1538 = vst [vmem:[%s2925_s29 + $0x98] sm:$0xff] %v2367_v12  ;;  %v1449_v28 = vadd.f32 %v2913_v19, %v1448_v26 }
 0x3ae   : > { %1537 = vst [vmem:[%s2925_s29 + $0x90] sm:$0xff] %v2369_v27  ;;  %2378 = vtanh.f32 %v1454_v25 }
 0x3af   : > { %2380 = vtanh.f32 %v1449_v28  ;;  %v2162_v29 = vpop.f32.mrb[52].mxu1 }
 0x3b0   : > { %v2371_v30 = vpop.eup %2370  ;;  %v1464_v31 = vadd.f32 %v2162_v29, %v2913_v19  ;;  %v1458_v32 = vpop.f32.mrb[53].mxu1 }
 0x3b1   : > { %v2373_v33 = vpop.eup %2372  ;;  %1540 = vst [vmem:[%s2925_s29 + $0xa8] sm:$0xff] %v2371_v30  ;;  %v1459_v34 = vadd.f32 %v2913_v19, %v1458_v32 }
 0x3b2   : > { %1539 = vst [vmem:[%s2925_s29 + $0xa0] sm:$0xff] %v2373_v33  ;;  %2382 = vtanh.f32 %v1464_v31 }
 0x3b3   : > { %2384 = vtanh.f32 %v1459_v34  ;;  %v2165_v35 = vpop.f32.mrb[54].mxu1 }
 0x3b4   : > { %v2375_v36 = vpop.eup %2374  ;;  %v1474_v37 = vadd.f32 %v2165_v35, %v2913_v19  ;;  %v1468_v38 = vpop.f32.mrb[55].mxu1 }
 0x3b5   : > { %v2377_v39 = vpop.eup %2376  ;;  %1542 = vst [vmem:[%s2925_s29 + $0xb8] sm:$0xff] %v2375_v36  ;;  %v1469_v40 = vadd.f32 %v2913_v19, %v1468_v38 }
 0x3b6   : > { %1541 = vst [vmem:[%s2925_s29 + $0xb0] sm:$0xff] %v2377_v39  ;;  %2386 = vtanh.f32 %v1474_v37 }
 0x3b7   : > { %2388 = vtanh.f32 %v1469_v40  ;;  %v2168_v41 = vpop.f32.mrb[56].mxu1 }
 0x3b8   : > { %v2379_v42 = vpop.eup %2378  ;;  %v1484_v43 = vadd.f32 %v2168_v41, %v2913_v19  ;;  %v1478_v44 = vpop.f32.mrb[57].mxu1 }
 0x3b9   : > { %v2381_v45 = vpop.eup %2380  ;;  %1544 = vst [vmem:[%s2925_s29 + $0xc8] sm:$0xff] %v2379_v42  ;;  %v1479_v46 = vadd.f32 %v2913_v19, %v1478_v44 }
 0x3ba   : > { %1543 = vst [vmem:[%s2925_s29 + $0xc0] sm:$0xff] %v2381_v45  ;;  %2390 = vtanh.f32 %v1484_v43 }
 0x3bb   : > { %2392 = vtanh.f32 %v1479_v46 }
 0x3bc   : > { %v2383_v47 = vpop.eup %2382 }
 0x3bd   : > { %v2385_v48 = vpop.eup %2384  ;;  %1546 = vst [vmem:[%s2925_s29 + $0xd8] sm:$0xff] %v2383_v47 }
 0x3be   : > { %1545 = vst [vmem:[%s2925_s29 + $0xd0] sm:$0xff] %v2385_v48 }
 0x3c0   : > { %v2387_v49 = vpop.eup %2386 }
 0x3c1   : > { %v2389_v50 = vpop.eup %2388  ;;  %1548 = vst [vmem:[%s2925_s29 + $0xe8] sm:$0xff] %v2387_v49 }
 0x3c2   : > { %1547 = vst [vmem:[%s2925_s29 + $0xe0] sm:$0xff] %v2389_v50 }
 0x3c4   : > { %v2391_v19 = vpop.eup %2390 }
 0x3c5   : > { %v2393_v51 = vpop.eup %2392  ;;  %1550 = vst [vmem:[%s2925_s29 + $0xf8] sm:$0xff] %v2391_v19 }
 0x3c6   : > { %1549 = vst [vmem:[%s2925_s29 + $0xf0] sm:$0xff] %v2393_v51 }
 0x3c7   : > { %2407 = shalt.err (!%p2404_p3)
}
 0x3c8   : > { %s2408_s17 = scalar_lea.hbm %s2987_s19, 4096  ;;  %s2412_s21 = scalar_lea.hbm %s3043_s7, 32768 }
 0x3c9   : > { %p2409_p4 = scmp.ne.s32.totalorder %s2987_s19, %s2408_s17  ;;  %p2413_p9 = scmp.lt.u32.totalorder %s2987_s19, %s3043_s7 }
 0x3ca   : > { %p2414_p10 = scmp.lt.u32.totalorder %s2412_s21, %s2408_s17  ;;  %p2416_p12 = scmp.lt.u32.totalorder %s2408_s17, %s2987_s19 }
 0x3cb   : > { %p2410_p7 = pnand %p2409_p4, %p2539_p5 }
 0x3cc   : > { %p2415_p11 = por %p2414_p10, %p2413_p9 }
 0x3cd   : > { %p2411_p8 = pneg %p2410_p7 }
 0x3ce   : > { %p2417_p13 = por %p2416_p12, %p2415_p11 }
 0x3d0   : > { %p2418_p0 = pnand %p2417_p13, %p2411_p8 }
 0x3d2   : > { %2421 = shalt.err (!%p2418_p0)
}
 0x3d3   : > { %s2459_s8 = smov 128   ;;  %s2460_s9 = smov 8  }
 0x3d4   : > { %2289 = dma.vmem_to_hbm [thread:$0]  (%p2539_p5), %s2989_s23, 4096, %s2987_s19, %s2995_s28, %s2459_s8, %s2459_s8, %s2460_s9  }
 0x3d5 PF: > { %p2295_p1 = scmp.ge.s32.totalorder %s2456_s27, 2  ;;  %s1580_s13 = sand.u32 1, %s2444_s24  }
 0x3d6   : > { %s1581_s14 = scalar_lea.sflag [#allocation3], %s1580_s13 }
 0x3d7   : > { %p2292_p2 = pnand %p2295_p1, %p2543_p6 }
 0x3d9   : > { %2439 = dma.done.wait (!%p2292_p2), %s1581_s14, 4096  }
 0x3da   : > { %2441 = vsyncadd (!%p2292_p2), %s1581_s14, 4294963200  ;;  %p17_p3 = scmp.ge.s32.totalorder %s2526_s30, 10   ;;  %s3046_s24 = smov %s2448_s25 }
 0x3db   : > { %s3047_s25 = smov %s2452_s26  ;;  %s3048_s26 = smov %s2537_s10 }
 0x3dc   : > { %s3049_s27 = smov %s2526_s30  ;;  %19 = sbr.rel (!%p17_p3) target bundleno = 3 (0x3), region = 85 }
 0x3e3   :  { %1586 = vsyncpa [#allocation3], 1 }
 0x3e4   :  { %1588 = vsyncpa [#allocation3 + $0x1], 1 }

</bundles_post_ra>
